<compile_context>
chip_gen: v7x
topology: tpu7x:2x2x1
jax: 0.10.0
libtpu: 0.0.40
codegen_flags: <defaults>
</compile_context>

<pallas_src>
import jax
import jax.numpy as jnp
import numpy as np
from jax.experimental import pallas as pl
from jax.experimental.pallas import tpu as pltpu

KSIZE = 7
PAD = (KSIZE - 1) // 2
BN_EPS = 1e-5
_COMBINE_CHUNK = 128      # channels rescaled per inner step (bounds VMEM temps)


def _conv_gate(pad_ref, z_max, z_mean, bm_ref, bias):
    """One SpatialGate tail: 7x7 "same" conv (2->1 ch, BN folded) + sigmoid.

    The column (j) direction of the conv is folded into precomputed banded
    matrices, so the whole conv is 7 MXU matmuls:

        out = sum_i  pad[i:i+R, :] @ bm[i]          # (R, 2S) @ (2S, S)

    pad_ref : (R + 2*PAD, 2*S) f32 VMEM scratch; lanes [0:S] stage the max map,
              lanes [S:2S] the mean map; only rows carry zero padding.
    z_max   : (R, S) f32 max-pooled map
    z_mean  : (R, S) f32 mean-pooled map
    bm_ref  : (KSIZE, 2*S, S) f32 banded, BN-folded conv weights
    bias    : folded BN bias scalar (SMEM read)
    returns : (R, S) f32 sigmoid scale map
    """
    R, S = z_max.shape
    S2 = 2 * S
    # Halo-only zeroing: only the 2*PAD padding rows are cleared each grid step
    # (scratch persists per core across steps); the interior is fully
    # overwritten right below, so this stays megacore-safe.
    pad_ref[pl.ds(0, PAD), :] = jnp.zeros((PAD, S2), jnp.float32)
    pad_ref[pl.ds(R + PAD, PAD), :] = jnp.zeros((PAD, S2), jnp.float32)
    pad_ref[pl.ds(PAD, R), pl.ds(0, S)] = z_max
    pad_ref[pl.ds(PAD, R), pl.ds(S, S)] = z_mean

    acc = jnp.zeros((R, S), jnp.float32)
    for i in range(KSIZE):                       # static 7-step loop -> 7 matmuls
        acc = acc + jnp.dot(pad_ref[pl.ds(i, R), :], bm_ref[i],
                            preferred_element_type=jnp.float32)
    return jax.nn.sigmoid(acc + bias)


def _triplet_kernel(b_ref, bm_s_ref, bm_h_ref, bm_w_ref, x_ref, o_ref,
                    pad_s, pad_h, pad_w):
    """Fused TripletAttention for one batch element.

    x_ref/o_ref : (1, C, H, W) VMEM blocks (native dtype; never copied to f32)
    b_ref       : (3,) SMEM  BN-folded biases          [spatial, gateH, gateW]
    bm_*_ref    : (7, 2S, S) VMEM banded conv weights  (S = W, W, H)
    pad_*       : VMEM staging scratch for the three small convs
    """
    _, C, H, W = x_ref.shape
    x = x_ref[0]                                   # (C, H, W), native dtype
    third = 1.0 / 3.0

    # z-pools (max/mean over C, H, W) feed the three gates.
    # TODO(synk): fuse the six reductions into one sweep over the block.
    s0 = _conv_gate(pad_s,
                    jnp.max(x, axis=0).astype(jnp.float32),
                    jnp.mean(x, axis=0).astype(jnp.float32),
                    bm_s_ref, b_ref[0]) * third     # (H, W)  SpatialGate
    s1 = _conv_gate(pad_h,
                    jnp.max(x, axis=1).astype(jnp.float32),
                    jnp.mean(x, axis=1).astype(jnp.float32),
                    bm_h_ref, b_ref[1]) * third     # (C, W)  ChannelGateH
    s2 = _conv_gate(pad_w,
                    jnp.max(x, axis=2).astype(jnp.float32),
                    jnp.mean(x, axis=2).astype(jnp.float32),
                    bm_w_ref, b_ref[2]) * third     # (C, H)  ChannelGateW

    # out = x * (s0 + s1 + s2), applied in channel chunks so no (C,H,W) f32
    # temporary is materialized; the s2 lanes->sublanes relayout happens on
    # small (chunk, H) maps instead of inside a full-block expression.
    for c0 in range(0, C, _COMBINE_CHUNK):
        cs = min(_COMBINE_CHUNK, C - c0)
        xk = x_ref[0, pl.ds(c0, cs)]                # (cs, H, W) native dtype
        comb = (s0[None, :, :]
                + s1[c0:c0 + cs][:, None, :]
                + s2[c0:c0 + cs][:, :, None])       # (cs, H, W) f32, small
        o_ref[0, pl.ds(c0, cs)] = (xk * comb.astype(xk.dtype)).astype(o_ref.dtype)


def _fold_bn(w, bn):
    """Fold eval-mode BatchNorm2d(1) into the 2->1 conv: w' = w*s, b' = beta - mean*s."""
    gamma, beta, mean, var = bn[0], bn[1], bn[2], bn[3]
    s = gamma * jax.lax.rsqrt(var + BN_EPS)
    return w * s, beta - mean * s


def _banded_weights(wf, S):
    """(2, 7, 7) folded conv weights -> (7, 2S, S) banded matrices B with
    B[i, c*S + s', s] = wf[c, i, s' - s + PAD]   (zero outside the 7-wide band),
    so that the 'same'-padded 2-channel 7x7 conv of an (R, S) map equals
        sum_i  rowpad(z)[i:i+R, :] @ B[i]
    with z staged as a row-padded (R+6, 2S) buffer ([max | mean] on lanes)."""
    sp = jnp.arange(S)[:, None]           # source column s'
    s = jnp.arange(S)[None, :]            # output column s
    j = sp - s + PAD                      # kernel tap index along the column dim
    valid = (j >= 0) & (j < KSIZE)
    jc = jnp.clip(j, 0, KSIZE - 1)
    mats = []
    for i in range(KSIZE):
        per_c = [jnp.where(valid, wf[c, i, :][jc], 0.0) for c in range(2)]
        mats.append(jnp.concatenate(per_c, axis=0))           # (2S, S)
    return jnp.stack(mats, axis=0).astype(jnp.float32)         # (7, 2S, S)


@jax.jit
def triplet_attention(x, w_h, w_w, w_s, bn_h, bn_w, bn_s):
    """x: (B, C, H, W). w_*: (2, 7, 7) per-branch conv weights. bn_*: (4,) per-branch BN."""
    B, C, H, W = x.shape

    ws_f, bs = _fold_bn(w_s, bn_s)                 # SpatialGate  (pool over C)
    wh_f, bh = _fold_bn(w_h, bn_h)                 # ChannelGateH (pool over H)
    ww_f, bw = _fold_bn(w_w, bn_w)                 # ChannelGateW (pool over W)
    # The W-gate conv is evaluated in (C, H) layout inside the kernel, the
    # transpose of its PyTorch (H, C) spatial layout -> swap kernel i/j.
    ww_t = jnp.transpose(ww_f, (0, 2, 1))

    bm_s = _banded_weights(ws_f, W)                # (7, 2W, W), map (H, W)
    bm_h = _banded_weights(wh_f, W)                # (7, 2W, W), map (C, W)
    bm_w = _banded_weights(ww_t, H)                # (7, 2H, H), map (C, H)
    b_all = jnp.stack([bs, bh, bw]).astype(jnp.float32)

    # Explicit VMEM budget: double-buffered in/out blocks + banded weights +
    # pooled maps / conv scratch + per-chunk combine temporaries + headroom.
    blk = C * H * W * x.dtype.itemsize
    small = 4 * (2 * KSIZE * 2 * W * W + KSIZE * 2 * H * H)
    maps = 4 * 8 * max(H * W, C * W, C * H)
    chunk = 4 * 3 * min(C, _COMBINE_CHUNK) * H * W
    need = 4 * blk + 2 * small + maps + chunk + (2 << 20)
    vmem_limit = int(min(128 << 20, max(32 << 20, need)))

    return pl.pallas_call(
        _triplet_kernel,
        out_shape=jax.ShapeDtypeStruct((B, C, H, W), x.dtype),
        grid_spec=pltpu.PrefetchScalarGridSpec(
            num_scalar_prefetch=0,
            grid=(B,),
            in_specs=[
                pl.BlockSpec(memory_space=pltpu.MemorySpace.SMEM),      # biases
                pl.BlockSpec((KSIZE, 2 * W, W), lambda b: (0, 0, 0)),   # bm_s
                pl.BlockSpec((KSIZE, 2 * W, W), lambda b: (0, 0, 0)),   # bm_h
                pl.BlockSpec((KSIZE, 2 * H, H), lambda b: (0, 0, 0)),   # bm_w
                pl.BlockSpec((1, C, H, W), lambda b: (b, 0, 0, 0)),     # x
            ],
            out_specs=pl.BlockSpec((1, C, H, W), lambda b: (b, 0, 0, 0)),
            scratch_shapes=[
                pltpu.VMEM((H + 2 * PAD, 2 * W), jnp.float32),   # spatial gate
                pltpu.VMEM((C + 2 * PAD, 2 * W), jnp.float32),   # H gate
                pltpu.VMEM((C + 2 * PAD, 2 * H), jnp.float32),   # W gate
            ],
        ),
        compiler_params=pltpu.CompilerParams(
            dimension_semantics=("parallel",),
            vmem_limit_bytes=vmem_limit),
    )(b_all, bm_s, bm_h, bm_w, x)


# ---------------- pure-JAX reference (for correctness check) ----------------
def _spatial_gate_ref(x, w, bn):
    z = jnp.concatenate(
        [jnp.max(x, axis=1, keepdims=True), jnp.mean(x, axis=1, keepdims=True)],
        axis=1)
    y = jax.lax.conv_general_dilated(
        z, w.reshape(1, 2, KSIZE, KSIZE), window_strides=(1, 1),
        padding=[(PAD, PAD), (PAD, PAD)],
        dimension_numbers=("NCHW", "OIHW", "NCHW"))
    gamma, beta, mean, var = bn[0], bn[1], bn[2], bn[3]
    y = (y - mean) * jax.lax.rsqrt(var + BN_EPS) * gamma + beta
    return x * jax.nn.sigmoid(y)


def _triplet_attention_ref(x, w_h, w_w, w_s, bn_h, bn_w, bn_s):
    xh = jnp.transpose(x, (0, 2, 1, 3))
    o1 = jnp.transpose(_spatial_gate_ref(xh, w_h, bn_h), (0, 2, 1, 3))
    xw = jnp.transpose(x, (0, 3, 2, 1))
    o2 = jnp.transpose(_spatial_gate_ref(xw, w_w, bn_w), (0, 3, 2, 1))
    o0 = _spatial_gate_ref(x, w_s, bn_s)
    return (1.0 / 3.0) * (o0 + o1 + o2)


if __name__ == "__main__":
    B, C, H, W = 2, 4, 16, 16
    key = jax.random.PRNGKey(0)
    kx, ks, kh, kw, kb = jax.random.split(key, 5)

    x = jax.random.normal(kx, (B, C, H, W), jnp.float32)

    # Conv2d(2, 1, 7, bias=False) init: fan_in = 2*7*7.
    def conv_init(k):
        bound = 1.0 / np.sqrt(2 * KSIZE * KSIZE)
        return jax.random.uniform(k, (2, KSIZE, KSIZE), jnp.float32, -bound, bound)

    w_s = conv_init(ks)   # SpatialGate   (pool over C)
    w_h = conv_init(kh)   # ChannelGateH  (pool over H)
    w_w = conv_init(kw)   # ChannelGateW  (pool over W)

    # Independent eval-mode BatchNorm2d(1) per gate: [gamma, beta, mean, var].
    def bn_init(k):
        kg, kbeta, km, kv = jax.random.split(k, 4)
        gamma = jax.random.uniform(kg, (), jnp.float32, 0.5, 1.5)
        beta = jax.random.normal(kbeta, (), jnp.float32) * 0.1
        mean = jax.random.normal(km, (), jnp.float32) * 0.1
        var = jax.random.uniform(kv, (), jnp.float32, 0.5, 1.5)
        return jnp.stack([gamma, beta, mean, var])

    kb1, kb2, kb3 = jax.random.split(kb, 3)
    bn_s, bn_h, bn_w = bn_init(kb1), bn_init(kb2), bn_init(kb3)

    out = triplet_attention(x, w_h, w_w, w_s, bn_h, bn_w, bn_s)
    out = jax.block_until_ready(out)

    ref = _triplet_attention_ref(x, w_h, w_w, w_s, bn_h, bn_w, bn_s)
    # The gate convs now run on the MXU; at default matmul precision the f32
    # operands may be rounded per bf16 pass, so compare with a tolerance that
    # covers that worst case on O(1) values.
    np.testing.assert_allclose(np.asarray(out), np.asarray(ref),
                               rtol=1e-2, atol=1e-2)
    print("KERNEL_OK")
</pallas_src>

<mosaic_0001>
module attributes {stable_mosaic.version = 11 : i64} {
  func.func @_triplet_kernel(%arg0: i32, %arg1: memref<3xf32, #tpu.memory_space<smem>>, %arg2: memref<7x32x16xf32, #tpu.memory_space<vmem>>, %arg3: memref<7x32x16xf32, #tpu.memory_space<vmem>>, %arg4: memref<7x32x16xf32, #tpu.memory_space<vmem>>, %arg5: memref<1x4x16x16xf32, #tpu.memory_space<vmem>>, %arg6: memref<1x4x16x16xf32, #tpu.memory_space<vmem>>, %arg7: memref<22x32xf32, #tpu.memory_space<vmem>>, %arg8: memref<10x32xf32, #tpu.memory_space<vmem>>, %arg9: memref<10x32xf32, #tpu.memory_space<vmem>>) attributes {dimension_semantics = [#tpu.dimension_semantics<parallel>], iteration_bounds = array<i64: 2>, scalar_prefetch = 0 : i64, scratch_operands = 3 : i64, tpu.core_type = #tpu.core_type<tc>, window_params = [{transform_indices = @transform_0, window_bounds = array<i64: 3>}, {pipeline_mode = #tpu.pipeline_mode<synchronous>, transform_indices = @transform_1, window_bounds = array<i64: 7, 32, 16>}, {pipeline_mode = #tpu.pipeline_mode<synchronous>, transform_indices = @transform_2, window_bounds = array<i64: 7, 32, 16>}, {pipeline_mode = #tpu.pipeline_mode<synchronous>, transform_indices = @transform_3, window_bounds = array<i64: 7, 32, 16>}, {transform_indices = @transform_4, window_bounds = array<i64: 1, 4, 16, 16>}, {transform_indices = @transform_5, window_bounds = array<i64: 1, 4, 16, 16>}]} {
    %c0 = arith.constant 0 : index
    %c0_0 = arith.constant 0 : index
    %c0_1 = arith.constant 0 : index
    %c0_2 = arith.constant 0 : index
    %0 = vector.load %arg5[%c0, %c0_0, %c0_1, %c0_2] : memref<1x4x16x16xf32, #tpu.memory_space<vmem>>, vector<1x4x16x16xf32>
    %1 = vector.shape_cast %0 : vector<1x4x16x16xf32> to vector<4x16x16xf32>
    %cst = arith.constant dense<0xFF800000> : vector<16x16xf32>
    %2 = vector.multi_reduction <maximumf>, %1, %cst [0] : vector<4x16x16xf32> to vector<16x16xf32>
    %cst_3 = arith.constant dense<0.000000e+00> : vector<16x16xf32>
    %3 = vector.multi_reduction <add>, %1, %cst_3 [0] : vector<4x16x16xf32> to vector<16x16xf32>
    %cst_4 = arith.constant 4.000000e+00 : f32
    %4 = vector.broadcast %cst_4 : f32 to vector<16x16xf32>
    %5 = arith.divf %3, %4 : vector<16x16xf32>
    %c0_5 = arith.constant 0 : index
    %6 = memref.load %arg1[%c0_5] : memref<3xf32, #tpu.memory_space<smem>>
    %cst_6 = arith.constant 0.000000e+00 : f32
    %7 = vector.broadcast %cst_6 : f32 to vector<3x32xf32>
    %c0_7 = arith.constant 0 : index
    %c0_8 = arith.constant 0 : index
    %8 = vector.load %arg7[%c0_7, %c0_8] : memref<22x32xf32, #tpu.memory_space<vmem>>, vector<3x32xf32>
    tpu.vector_store %arg7[%c0_7, %c0_8], %7 {strides = array<i32>} : memref<22x32xf32, #tpu.memory_space<vmem>>, vector<3x32xf32>,
    %cst_9 = arith.constant 0.000000e+00 : f32
    %9 = vector.broadcast %cst_9 : f32 to vector<3x32xf32>
    %c19 = arith.constant 19 : index
    %c0_10 = arith.constant 0 : index
    %10 = vector.load %arg7[%c19, %c0_10] : memref<22x32xf32, #tpu.memory_space<vmem>>, vector<3x32xf32>
    tpu.vector_store %arg7[%c19, %c0_10], %9 {strides = array<i32>} : memref<22x32xf32, #tpu.memory_space<vmem>>, vector<3x32xf32>,
    %c3 = arith.constant 3 : index
    %c0_11 = arith.constant 0 : index
    %11 = vector.load %arg7[%c3, %c0_11] : memref<22x32xf32, #tpu.memory_space<vmem>>, vector<16x16xf32>
    tpu.vector_store %arg7[%c3, %c0_11], %2 {strides = array<i32>} : memref<22x32xf32, #tpu.memory_space<vmem>>, vector<16x16xf32>,
    %c3_12 = arith.constant 3 : index
    %c16 = arith.constant 16 : index
    %12 = vector.load %arg7[%c3_12, %c16] : memref<22x32xf32, #tpu.memory_space<vmem>>, vector<16x16xf32>
    tpu.vector_store %arg7[%c3_12, %c16], %5 {strides = array<i32>} : memref<22x32xf32, #tpu.memory_space<vmem>>, vector<16x16xf32>,
    %cst_13 = arith.constant 0.000000e+00 : f32
    %13 = vector.broadcast %cst_13 : f32 to vector<16x16xf32>
    %c0_14 = arith.constant 0 : index
    %c0_15 = arith.constant 0 : index
    %14 = vector.load %arg7[%c0_14, %c0_15] : memref<22x32xf32, #tpu.memory_space<vmem>>, vector<16x32xf32>
    %c0_16 = arith.constant 0 : index
    %c0_17 = arith.constant 0 : index
    %c0_18 = arith.constant 0 : index
    %15 = vector.load %arg2[%c0_16, %c0_17, %c0_18] : memref<7x32x16xf32, #tpu.memory_space<vmem>>, vector<1x32x16xf32>
    %16 = vector.shape_cast %15 : vector<1x32x16xf32> to vector<32x16xf32>
    %cst_19 = arith.constant dense<0.000000e+00> : vector<16x16xf32>
    %17 = tpu.matmul %14, %16, %cst_19 {dimension_numbers = #tpu.dot_dimension_numbers<[1], [0], [0], [1], [0, 0, 1, 1], [], []>} : vector<16x32xf32>, vector<32x16xf32>, vector<16x16xf32> -> vector<16x16xf32>
    %18 = arith.addf %13, %17 : vector<16x16xf32>
    %c1 = arith.constant 1 : index
    %c0_20 = arith.constant 0 : index
    %19 = vector.load %arg7[%c1, %c0_20] : memref<22x32xf32, #tpu.memory_space<vmem>>, vector<16x32xf32>
    %c1_21 = arith.constant 1 : index
    %c0_22 = arith.constant 0 : index
    %c0_23 = arith.constant 0 : index
    %20 = vector.load %arg2[%c1_21, %c0_22, %c0_23] : memref<7x32x16xf32, #tpu.memory_space<vmem>>, vector<1x32x16xf32>
    %21 = vector.shape_cast %20 : vector<1x32x16xf32> to vector<32x16xf32>
    %cst_24 = arith.constant dense<0.000000e+00> : vector<16x16xf32>
    %22 = tpu.matmul %19, %21, %cst_24 {dimension_numbers = #tpu.dot_dimension_numbers<[1], [0], [0], [1], [0, 0, 1, 1], [], []>} : vector<16x32xf32>, vector<32x16xf32>, vector<16x16xf32> -> vector<16x16xf32>
    %23 = arith.addf %18, %22 : vector<16x16xf32>
    %c2 = arith.constant 2 : index
    %c0_25 = arith.constant 0 : index
    %24 = vector.load %arg7[%c2, %c0_25] : memref<22x32xf32, #tpu.memory_space<vmem>>, vector<16x32xf32>
    %c2_26 = arith.constant 2 : index
    %c0_27 = arith.constant 0 : index
    %c0_28 = arith.constant 0 : index
    %25 = vector.load %arg2[%c2_26, %c0_27, %c0_28] : memref<7x32x16xf32, #tpu.memory_space<vmem>>, vector<1x32x16xf32>
    %26 = vector.shape_cast %25 : vector<1x32x16xf32> to vector<32x16xf32>
    %cst_29 = arith.constant dense<0.000000e+00> : vector<16x16xf32>
    %27 = tpu.matmul %24, %26, %cst_29 {dimension_numbers = #tpu.dot_dimension_numbers<[1], [0], [0], [1], [0, 0, 1, 1], [], []>} : vector<16x32xf32>, vector<32x16xf32>, vector<16x16xf32> -> vector<16x16xf32>
    %28 = arith.addf %23, %27 : vector<16x16xf32>
    %c3_30 = arith.constant 3 : index
    %c0_31 = arith.constant 0 : index
    %29 = vector.load %arg7[%c3_30, %c0_31] : memref<22x32xf32, #tpu.memory_space<vmem>>, vector<16x32xf32>
    %c3_32 = arith.constant 3 : index
    %c0_33 = arith.constant 0 : index
    %c0_34 = arith.constant 0 : index
    %30 = vector.load %arg2[%c3_32, %c0_33, %c0_34] : memref<7x32x16xf32, #tpu.memory_space<vmem>>, vector<1x32x16xf32>
    %31 = vector.shape_cast %30 : vector<1x32x16xf32> to vector<32x16xf32>
    %cst_35 = arith.constant dense<0.000000e+00> : vector<16x16xf32>
    %32 = tpu.matmul %29, %31, %cst_35 {dimension_numbers = #tpu.dot_dimension_numbers<[1], [0], [0], [1], [0, 0, 1, 1], [], []>} : vector<16x32xf32>, vector<32x16xf32>, vector<16x16xf32> -> vector<16x16xf32>
    %33 = arith.addf %28, %32 : vector<16x16xf32>
    %c4 = arith.constant 4 : index
    %c0_36 = arith.constant 0 : index
    %34 = vector.load %arg7[%c4, %c0_36] : memref<22x32xf32, #tpu.memory_space<vmem>>, vector<16x32xf32>
    %c4_37 = arith.constant 4 : index
    %c0_38 = arith.constant 0 : index
    %c0_39 = arith.constant 0 : index
    %35 = vector.load %arg2[%c4_37, %c0_38, %c0_39] : memref<7x32x16xf32, #tpu.memory_space<vmem>>, vector<1x32x16xf32>
    %36 = vector.shape_cast %35 : vector<1x32x16xf32> to vector<32x16xf32>
    %cst_40 = arith.constant dense<0.000000e+00> : vector<16x16xf32>
    %37 = tpu.matmul %34, %36, %cst_40 {dimension_numbers = #tpu.dot_dimension_numbers<[1], [0], [0], [1], [0, 0, 1, 1], [], []>} : vector<16x32xf32>, vector<32x16xf32>, vector<16x16xf32> -> vector<16x16xf32>
    %38 = arith.addf %33, %37 : vector<16x16xf32>
    %c5 = arith.constant 5 : index
    %c0_41 = arith.constant 0 : index
    %39 = vector.load %arg7[%c5, %c0_41] : memref<22x32xf32, #tpu.memory_space<vmem>>, vector<16x32xf32>
    %c5_42 = arith.constant 5 : index
    %c0_43 = arith.constant 0 : index
    %c0_44 = arith.constant 0 : index
    %40 = vector.load %arg2[%c5_42, %c0_43, %c0_44] : memref<7x32x16xf32, #tpu.memory_space<vmem>>, vector<1x32x16xf32>
    %41 = vector.shape_cast %40 : vector<1x32x16xf32> to vector<32x16xf32>
    %cst_45 = arith.constant dense<0.000000e+00> : vector<16x16xf32>
    %42 = tpu.matmul %39, %41, %cst_45 {dimension_numbers = #tpu.dot_dimension_numbers<[1], [0], [0], [1], [0, 0, 1, 1], [], []>} : vector<16x32xf32>, vector<32x16xf32>, vector<16x16xf32> -> vector<16x16xf32>
    %43 = arith.addf %38, %42 : vector<16x16xf32>
    %c6 = arith.constant 6 : index
    %c0_46 = arith.constant 0 : index
    %44 = vector.load %arg7[%c6, %c0_46] : memref<22x32xf32, #tpu.memory_space<vmem>>, vector<16x32xf32>
    %c6_47 = arith.constant 6 : index
    %c0_48 = arith.constant 0 : index
    %c0_49 = arith.constant 0 : index
    %45 = vector.load %arg2[%c6_47, %c0_48, %c0_49] : memref<7x32x16xf32, #tpu.memory_space<vmem>>, vector<1x32x16xf32>
    %46 = vector.shape_cast %45 : vector<1x32x16xf32> to vector<32x16xf32>
    %cst_50 = arith.constant dense<0.000000e+00> : vector<16x16xf32>
    %47 = tpu.matmul %44, %46, %cst_50 {dimension_numbers = #tpu.dot_dimension_numbers<[1], [0], [0], [1], [0, 0, 1, 1], [], []>} : vector<16x32xf32>, vector<32x16xf32>, vector<16x16xf32> -> vector<16x16xf32>
    %48 = arith.addf %43, %47 : vector<16x16xf32>
    %49 = vector.broadcast %6 : f32 to vector<16x16xf32>
    %50 = arith.addf %48, %49 : vector<16x16xf32>
    %51 = arith.negf %50 : vector<16x16xf32>
    %52 = math.exp %51 : vector<16x16xf32>
    %cst_51 = arith.constant 1.000000e+00 : f32
    %53 = vector.broadcast %cst_51 : f32 to vector<16x16xf32>
    %54 = arith.addf %53, %52 : vector<16x16xf32>
    %55 = arith.divf %53, %54 : vector<16x16xf32>
    %cst_52 = arith.constant 0.333333343 : f32
    %56 = vector.broadcast %cst_52 : f32 to vector<16x16xf32>
    %57 = arith.mulf %55, %56 : vector<16x16xf32>
    %cst_53 = arith.constant dense<0xFF800000> : vector<4x16xf32>
    %58 = vector.multi_reduction <maximumf>, %1, %cst_53 [1] : vector<4x16x16xf32> to vector<4x16xf32>
    %cst_54 = arith.constant dense<0.000000e+00> : vector<4x16xf32>
    %59 = vector.multi_reduction <add>, %1, %cst_54 [1] : vector<4x16x16xf32> to vector<4x16xf32>
    %cst_55 = arith.constant 1.600000e+01 : f32
    %60 = vector.broadcast %cst_55 : f32 to vector<4x16xf32>
    %61 = arith.divf %59, %60 : vector<4x16xf32>
    %c1_56 = arith.constant 1 : index
    %62 = memref.load %arg1[%c1_56] : memref<3xf32, #tpu.memory_space<smem>>
    %cst_57 = arith.constant 0.000000e+00 : f32
    %63 = vector.broadcast %cst_57 : f32 to vector<3x32xf32>
    %c0_58 = arith.constant 0 : index
    %c0_59 = arith.constant 0 : index
    %64 = vector.load %arg8[%c0_58, %c0_59] : memref<10x32xf32, #tpu.memory_space<vmem>>, vector<3x32xf32>
    tpu.vector_store %arg8[%c0_58, %c0_59], %63 {strides = array<i32>} : memref<10x32xf32, #tpu.memory_space<vmem>>, vector<3x32xf32>,
    %cst_60 = arith.constant 0.000000e+00 : f32
    %65 = vector.broadcast %cst_60 : f32 to vector<3x32xf32>
    %c7 = arith.constant 7 : index
    %c0_61 = arith.constant 0 : index
    %66 = vector.load %arg8[%c7, %c0_61] : memref<10x32xf32, #tpu.memory_space<vmem>>, vector<3x32xf32>
    tpu.vector_store %arg8[%c7, %c0_61], %65 {strides = array<i32>} : memref<10x32xf32, #tpu.memory_space<vmem>>, vector<3x32xf32>,
    %c3_62 = arith.constant 3 : index
    %c0_63 = arith.constant 0 : index
    %67 = vector.load %arg8[%c3_62, %c0_63] : memref<10x32xf32, #tpu.memory_space<vmem>>, vector<4x16xf32>
    tpu.vector_store %arg8[%c3_62, %c0_63], %58 {strides = array<i32>} : memref<10x32xf32, #tpu.memory_space<vmem>>, vector<4x16xf32>,
    %c3_64 = arith.constant 3 : index
    %c16_65 = arith.constant 16 : index
    %68 = vector.load %arg8[%c3_64, %c16_65] : memref<10x32xf32, #tpu.memory_space<vmem>>, vector<4x16xf32>
    tpu.vector_store %arg8[%c3_64, %c16_65], %61 {strides = array<i32>} : memref<10x32xf32, #tpu.memory_space<vmem>>, vector<4x16xf32>,
    %cst_66 = arith.constant 0.000000e+00 : f32
    %69 = vector.broadcast %cst_66 : f32 to vector<4x16xf32>
    %c0_67 = arith.constant 0 : index
    %c0_68 = arith.constant 0 : index
    %70 = vector.load %arg8[%c0_67, %c0_68] : memref<10x32xf32, #tpu.memory_space<vmem>>, vector<4x32xf32>
    %c0_69 = arith.constant 0 : index
    %c0_70 = arith.constant 0 : index
    %c0_71 = arith.constant 0 : index
    %71 = vector.load %arg3[%c0_69, %c0_70, %c0_71] : memref<7x32x16xf32, #tpu.memory_space<vmem>>, vector<1x32x16xf32>
    %72 = vector.shape_cast %71 : vector<1x32x16xf32> to vector<32x16xf32>
    %cst_72 = arith.constant dense<0.000000e+00> : vector<4x16xf32>
    %73 = tpu.matmul %70, %72, %cst_72 {dimension_numbers = #tpu.dot_dimension_numbers<[1], [0], [0], [1], [0, 0, 1, 1], [], []>} : vector<4x32xf32>, vector<32x16xf32>, vector<4x16xf32> -> vector<4x16xf32>
    %74 = arith.addf %69, %73 : vector<4x16xf32>
    %c1_73 = arith.constant 1 : index
    %c0_74 = arith.constant 0 : index
    %75 = vector.load %arg8[%c1_73, %c0_74] : memref<10x32xf32, #tpu.memory_space<vmem>>, vector<4x32xf32>
    %c1_75 = arith.constant 1 : index
    %c0_76 = arith.constant 0 : index
    %c0_77 = arith.constant 0 : index
    %76 = vector.load %arg3[%c1_75, %c0_76, %c0_77] : memref<7x32x16xf32, #tpu.memory_space<vmem>>, vector<1x32x16xf32>
    %77 = vector.shape_cast %76 : vector<1x32x16xf32> to vector<32x16xf32>
    %cst_78 = arith.constant dense<0.000000e+00> : vector<4x16xf32>
    %78 = tpu.matmul %75, %77, %cst_78 {dimension_numbers = #tpu.dot_dimension_numbers<[1], [0], [0], [1], [0, 0, 1, 1], [], []>} : vector<4x32xf32>, vector<32x16xf32>, vector<4x16xf32> -> vector<4x16xf32>
    %79 = arith.addf %74, %78 : vector<4x16xf32>
    %c2_79 = arith.constant 2 : index
    %c0_80 = arith.constant 0 : index
    %80 = vector.load %arg8[%c2_79, %c0_80] : memref<10x32xf32, #tpu.memory_space<vmem>>, vector<4x32xf32>
    %c2_81 = arith.constant 2 : index
    %c0_82 = arith.constant 0 : index
    %c0_83 = arith.constant 0 : index
    %81 = vector.load %arg3[%c2_81, %c0_82, %c0_83] : memref<7x32x16xf32, #tpu.memory_space<vmem>>, vector<1x32x16xf32>
    %82 = vector.shape_cast %81 : vector<1x32x16xf32> to vector<32x16xf32>
    %cst_84 = arith.constant dense<0.000000e+00> : vector<4x16xf32>
    %83 = tpu.matmul %80, %82, %cst_84 {dimension_numbers = #tpu.dot_dimension_numbers<[1], [0], [0], [1], [0, 0, 1, 1], [], []>} : vector<4x32xf32>, vector<32x16xf32>, vector<4x16xf32> -> vector<4x16xf32>
    %84 = arith.addf %79, %83 : vector<4x16xf32>
    %c3_85 = arith.constant 3 : index
    %c0_86 = arith.constant 0 : index
    %85 = vector.load %arg8[%c3_85, %c0_86] : memref<10x32xf32, #tpu.memory_space<vmem>>, vector<4x32xf32>
    %c3_87 = arith.constant 3 : index
    %c0_88 = arith.constant 0 : index
    %c0_89 = arith.constant 0 : index
    %86 = vector.load %arg3[%c3_87, %c0_88, %c0_89] : memref<7x32x16xf32, #tpu.memory_space<vmem>>, vector<1x32x16xf32>
    %87 = vector.shape_cast %86 : vector<1x32x16xf32> to vector<32x16xf32>
    %cst_90 = arith.constant dense<0.000000e+00> : vector<4x16xf32>
    %88 = tpu.matmul %85, %87, %cst_90 {dimension_numbers = #tpu.dot_dimension_numbers<[1], [0], [0], [1], [0, 0, 1, 1], [], []>} : vector<4x32xf32>, vector<32x16xf32>, vector<4x16xf32> -> vector<4x16xf32>
    %89 = arith.addf %84, %88 : vector<4x16xf32>
    %c4_91 = arith.constant 4 : index
    %c0_92 = arith.constant 0 : index
    %90 = vector.load %arg8[%c4_91, %c0_92] : memref<10x32xf32, #tpu.memory_space<vmem>>, vector<4x32xf32>
    %c4_93 = arith.constant 4 : index
    %c0_94 = arith.constant 0 : index
    %c0_95 = arith.constant 0 : index
    %91 = vector.load %arg3[%c4_93, %c0_94, %c0_95] : memref<7x32x16xf32, #tpu.memory_space<vmem>>, vector<1x32x16xf32>
    %92 = vector.shape_cast %91 : vector<1x32x16xf32> to vector<32x16xf32>
    %cst_96 = arith.constant dense<0.000000e+00> : vector<4x16xf32>
    %93 = tpu.matmul %90, %92, %cst_96 {dimension_numbers = #tpu.dot_dimension_numbers<[1], [0], [0], [1], [0, 0, 1, 1], [], []>} : vector<4x32xf32>, vector<32x16xf32>, vector<4x16xf32> -> vector<4x16xf32>
    %94 = arith.addf %89, %93 : vector<4x16xf32>
    %c5_97 = arith.constant 5 : index
    %c0_98 = arith.constant 0 : index
    %95 = vector.load %arg8[%c5_97, %c0_98] : memref<10x32xf32, #tpu.memory_space<vmem>>, vector<4x32xf32>
    %c5_99 = arith.constant 5 : index
    %c0_100 = arith.constant 0 : index
    %c0_101 = arith.constant 0 : index
    %96 = vector.load %arg3[%c5_99, %c0_100, %c0_101] : memref<7x32x16xf32, #tpu.memory_space<vmem>>, vector<1x32x16xf32>
    %97 = vector.shape_cast %96 : vector<1x32x16xf32> to vector<32x16xf32>
    %cst_102 = arith.constant dense<0.000000e+00> : vector<4x16xf32>
    %98 = tpu.matmul %95, %97, %cst_102 {dimension_numbers = #tpu.dot_dimension_numbers<[1], [0], [0], [1], [0, 0, 1, 1], [], []>} : vector<4x32xf32>, vector<32x16xf32>, vector<4x16xf32> -> vector<4x16xf32>
    %99 = arith.addf %94, %98 : vector<4x16xf32>
    %c6_103 = arith.constant 6 : index
    %c0_104 = arith.constant 0 : index
    %100 = vector.load %arg8[%c6_103, %c0_104] : memref<10x32xf32, #tpu.memory_space<vmem>>, vector<4x32xf32>
    %c6_105 = arith.constant 6 : index
    %c0_106 = arith.constant 0 : index
    %c0_107 = arith.constant 0 : index
    %101 = vector.load %arg3[%c6_105, %c0_106, %c0_107] : memref<7x32x16xf32, #tpu.memory_space<vmem>>, vector<1x32x16xf32>
    %102 = vector.shape_cast %101 : vector<1x32x16xf32> to vector<32x16xf32>
    %cst_108 = arith.constant dense<0.000000e+00> : vector<4x16xf32>
    %103 = tpu.matmul %100, %102, %cst_108 {dimension_numbers = #tpu.dot_dimension_numbers<[1], [0], [0], [1], [0, 0, 1, 1], [], []>} : vector<4x32xf32>, vector<32x16xf32>, vector<4x16xf32> -> vector<4x16xf32>
    %104 = arith.addf %99, %103 : vector<4x16xf32>
    %105 = vector.broadcast %62 : f32 to vector<4x16xf32>
    %106 = arith.addf %104, %105 : vector<4x16xf32>
    %107 = arith.negf %106 : vector<4x16xf32>
    %108 = math.exp %107 : vector<4x16xf32>
    %cst_109 = arith.constant 1.000000e+00 : f32
    %109 = vector.broadcast %cst_109 : f32 to vector<4x16xf32>
    %110 = arith.addf %109, %108 : vector<4x16xf32>
    %111 = arith.divf %109, %110 : vector<4x16xf32>
    %cst_110 = arith.constant 0.333333343 : f32
    %112 = vector.broadcast %cst_110 : f32 to vector<4x16xf32>
    %113 = arith.mulf %111, %112 : vector<4x16xf32>
    %cst_111 = arith.constant dense<0xFF800000> : vector<4x16xf32>
    %114 = vector.multi_reduction <maximumf>, %1, %cst_111 [2] : vector<4x16x16xf32> to vector<4x16xf32>
    %cst_112 = arith.constant dense<0.000000e+00> : vector<4x16xf32>
    %115 = vector.multi_reduction <add>, %1, %cst_112 [2] : vector<4x16x16xf32> to vector<4x16xf32>
    %cst_113 = arith.constant 1.600000e+01 : f32
    %116 = vector.broadcast %cst_113 : f32 to vector<4x16xf32>
    %117 = arith.divf %115, %116 : vector<4x16xf32>
    %c2_114 = arith.constant 2 : index
    %118 = memref.load %arg1[%c2_114] : memref<3xf32, #tpu.memory_space<smem>>
    %cst_115 = arith.constant 0.000000e+00 : f32
    %119 = vector.broadcast %cst_115 : f32 to vector<3x32xf32>
    %c0_116 = arith.constant 0 : index
    %c0_117 = arith.constant 0 : index
    %120 = vector.load %arg9[%c0_116, %c0_117] : memref<10x32xf32, #tpu.memory_space<vmem>>, vector<3x32xf32>
    tpu.vector_store %arg9[%c0_116, %c0_117], %119 {strides = array<i32>} : memref<10x32xf32, #tpu.memory_space<vmem>>, vector<3x32xf32>,
    %cst_118 = arith.constant 0.000000e+00 : f32
    %121 = vector.broadcast %cst_118 : f32 to vector<3x32xf32>
    %c7_119 = arith.constant 7 : index
    %c0_120 = arith.constant 0 : index
    %122 = vector.load %arg9[%c7_119, %c0_120] : memref<10x32xf32, #tpu.memory_space<vmem>>, vector<3x32xf32>
    tpu.vector_store %arg9[%c7_119, %c0_120], %121 {strides = array<i32>} : memref<10x32xf32, #tpu.memory_space<vmem>>, vector<3x32xf32>,
    %c3_121 = arith.constant 3 : index
    %c0_122 = arith.constant 0 : index
    %123 = vector.load %arg9[%c3_121, %c0_122] : memref<10x32xf32, #tpu.memory_space<vmem>>, vector<4x16xf32>
    tpu.vector_store %arg9[%c3_121, %c0_122], %114 {strides = array<i32>} : memref<10x32xf32, #tpu.memory_space<vmem>>, vector<4x16xf32>,
    %c3_123 = arith.constant 3 : index
    %c16_124 = arith.constant 16 : index
    %124 = vector.load %arg9[%c3_123, %c16_124] : memref<10x32xf32, #tpu.memory_space<vmem>>, vector<4x16xf32>
    tpu.vector_store %arg9[%c3_123, %c16_124], %117 {strides = array<i32>} : memref<10x32xf32, #tpu.memory_space<vmem>>, vector<4x16xf32>,
    %cst_125 = arith.constant 0.000000e+00 : f32
    %125 = vector.broadcast %cst_125 : f32 to vector<4x16xf32>
    %c0_126 = arith.constant 0 : index
    %c0_127 = arith.constant 0 : index
    %126 = vector.load %arg9[%c0_126, %c0_127] : memref<10x32xf32, #tpu.memory_space<vmem>>, vector<4x32xf32>
    %c0_128 = arith.constant 0 : index
    %c0_129 = arith.constant 0 : index
    %c0_130 = arith.constant 0 : index
    %127 = vector.load %arg4[%c0_128, %c0_129, %c0_130] : memref<7x32x16xf32, #tpu.memory_space<vmem>>, vector<1x32x16xf32>
    %128 = vector.shape_cast %127 : vector<1x32x16xf32> to vector<32x16xf32>
    %cst_131 = arith.constant dense<0.000000e+00> : vector<4x16xf32>
    %129 = tpu.matmul %126, %128, %cst_131 {dimension_numbers = #tpu.dot_dimension_numbers<[1], [0], [0], [1], [0, 0, 1, 1], [], []>} : vector<4x32xf32>, vector<32x16xf32>, vector<4x16xf32> -> vector<4x16xf32>
    %130 = arith.addf %125, %129 : vector<4x16xf32>
    %c1_132 = arith.constant 1 : index
    %c0_133 = arith.constant 0 : index
    %131 = vector.load %arg9[%c1_132, %c0_133] : memref<10x32xf32, #tpu.memory_space<vmem>>, vector<4x32xf32>
    %c1_134 = arith.constant 1 : index
    %c0_135 = arith.constant 0 : index
    %c0_136 = arith.constant 0 : index
    %132 = vector.load %arg4[%c1_134, %c0_135, %c0_136] : memref<7x32x16xf32, #tpu.memory_space<vmem>>, vector<1x32x16xf32>
    %133 = vector.shape_cast %132 : vector<1x32x16xf32> to vector<32x16xf32>
    %cst_137 = arith.constant dense<0.000000e+00> : vector<4x16xf32>
    %134 = tpu.matmul %131, %133, %cst_137 {dimension_numbers = #tpu.dot_dimension_numbers<[1], [0], [0], [1], [0, 0, 1, 1], [], []>} : vector<4x32xf32>, vector<32x16xf32>, vector<4x16xf32> -> vector<4x16xf32>
    %135 = arith.addf %130, %134 : vector<4x16xf32>
    %c2_138 = arith.constant 2 : index
    %c0_139 = arith.constant 0 : index
    %136 = vector.load %arg9[%c2_138, %c0_139] : memref<10x32xf32, #tpu.memory_space<vmem>>, vector<4x32xf32>
    %c2_140 = arith.constant 2 : index
    %c0_141 = arith.constant 0 : index
    %c0_142 = arith.constant 0 : index
    %137 = vector.load %arg4[%c2_140, %c0_141, %c0_142] : memref<7x32x16xf32, #tpu.memory_space<vmem>>, vector<1x32x16xf32>
    %138 = vector.shape_cast %137 : vector<1x32x16xf32> to vector<32x16xf32>
    %cst_143 = arith.constant dense<0.000000e+00> : vector<4x16xf32>
    %139 = tpu.matmul %136, %138, %cst_143 {dimension_numbers = #tpu.dot_dimension_numbers<[1], [0], [0], [1], [0, 0, 1, 1], [], []>} : vector<4x32xf32>, vector<32x16xf32>, vector<4x16xf32> -> vector<4x16xf32>
    %140 = arith.addf %135, %139 : vector<4x16xf32>
    %c3_144 = arith.constant 3 : index
    %c0_145 = arith.constant 0 : index
    %141 = vector.load %arg9[%c3_144, %c0_145] : memref<10x32xf32, #tpu.memory_space<vmem>>, vector<4x32xf32>
    %c3_146 = arith.constant 3 : index
    %c0_147 = arith.constant 0 : index
    %c0_148 = arith.constant 0 : index
    %142 = vector.load %arg4[%c3_146, %c0_147, %c0_148] : memref<7x32x16xf32, #tpu.memory_space<vmem>>, vector<1x32x16xf32>
    %143 = vector.shape_cast %142 : vector<1x32x16xf32> to vector<32x16xf32>
    %cst_149 = arith.constant dense<0.000000e+00> : vector<4x16xf32>
    %144 = tpu.matmul %141, %143, %cst_149 {dimension_numbers = #tpu.dot_dimension_numbers<[1], [0], [0], [1], [0, 0, 1, 1], [], []>} : vector<4x32xf32>, vector<32x16xf32>, vector<4x16xf32> -> vector<4x16xf32>
    %145 = arith.addf %140, %144 : vector<4x16xf32>
    %c4_150 = arith.constant 4 : index
    %c0_151 = arith.constant 0 : index
    %146 = vector.load %arg9[%c4_150, %c0_151] : memref<10x32xf32, #tpu.memory_space<vmem>>, vector<4x32xf32>
    %c4_152 = arith.constant 4 : index
    %c0_153 = arith.constant 0 : index
    %c0_154 = arith.constant 0 : index
    %147 = vector.load %arg4[%c4_152, %c0_153, %c0_154] : memref<7x32x16xf32, #tpu.memory_space<vmem>>, vector<1x32x16xf32>
    %148 = vector.shape_cast %147 : vector<1x32x16xf32> to vector<32x16xf32>
    %cst_155 = arith.constant dense<0.000000e+00> : vector<4x16xf32>
    %149 = tpu.matmul %146, %148, %cst_155 {dimension_numbers = #tpu.dot_dimension_numbers<[1], [0], [0], [1], [0, 0, 1, 1], [], []>} : vector<4x32xf32>, vector<32x16xf32>, vector<4x16xf32> -> vector<4x16xf32>
    %150 = arith.addf %145, %149 : vector<4x16xf32>
    %c5_156 = arith.constant 5 : index
    %c0_157 = arith.constant 0 : index
    %151 = vector.load %arg9[%c5_156, %c0_157] : memref<10x32xf32, #tpu.memory_space<vmem>>, vector<4x32xf32>
    %c5_158 = arith.constant 5 : index
    %c0_159 = arith.constant 0 : index
    %c0_160 = arith.constant 0 : index
    %152 = vector.load %arg4[%c5_158, %c0_159, %c0_160] : memref<7x32x16xf32, #tpu.memory_space<vmem>>, vector<1x32x16xf32>
    %153 = vector.shape_cast %152 : vector<1x32x16xf32> to vector<32x16xf32>
    %cst_161 = arith.constant dense<0.000000e+00> : vector<4x16xf32>
    %154 = tpu.matmul %151, %153, %cst_161 {dimension_numbers = #tpu.dot_dimension_numbers<[1], [0], [0], [1], [0, 0, 1, 1], [], []>} : vector<4x32xf32>, vector<32x16xf32>, vector<4x16xf32> -> vector<4x16xf32>
    %155 = arith.addf %150, %154 : vector<4x16xf32>
    %c6_162 = arith.constant 6 : index
    %c0_163 = arith.constant 0 : index
    %156 = vector.load %arg9[%c6_162, %c0_163] : memref<10x32xf32, #tpu.memory_space<vmem>>, vector<4x32xf32>
    %c6_164 = arith.constant 6 : index
    %c0_165 = arith.constant 0 : index
    %c0_166 = arith.constant 0 : index
    %157 = vector.load %arg4[%c6_164, %c0_165, %c0_166] : memref<7x32x16xf32, #tpu.memory_space<vmem>>, vector<1x32x16xf32>
    %158 = vector.shape_cast %157 : vector<1x32x16xf32> to vector<32x16xf32>
    %cst_167 = arith.constant dense<0.000000e+00> : vector<4x16xf32>
    %159 = tpu.matmul %156, %158, %cst_167 {dimension_numbers = #tpu.dot_dimension_numbers<[1], [0], [0], [1], [0, 0, 1, 1], [], []>} : vector<4x32xf32>, vector<32x16xf32>, vector<4x16xf32> -> vector<4x16xf32>
    %160 = arith.addf %155, %159 : vector<4x16xf32>
    %161 = vector.broadcast %118 : f32 to vector<4x16xf32>
    %162 = arith.addf %160, %161 : vector<4x16xf32>
    %163 = arith.negf %162 : vector<4x16xf32>
    %164 = math.exp %163 : vector<4x16xf32>
    %cst_168 = arith.constant 1.000000e+00 : f32
    %165 = vector.broadcast %cst_168 : f32 to vector<4x16xf32>
    %166 = arith.addf %165, %164 : vector<4x16xf32>
    %167 = arith.divf %165, %166 : vector<4x16xf32>
    %cst_169 = arith.constant 0.333333343 : f32
    %168 = vector.broadcast %cst_169 : f32 to vector<4x16xf32>
    %169 = arith.mulf %167, %168 : vector<4x16xf32>
    %c0_170 = arith.constant 0 : index
    %c0_171 = arith.constant 0 : index
    %c0_172 = arith.constant 0 : index
    %c0_173 = arith.constant 0 : index
    %170 = vector.load %arg5[%c0_170, %c0_171, %c0_172, %c0_173] : memref<1x4x16x16xf32, #tpu.memory_space<vmem>>, vector<1x4x16x16xf32>
    %171 = vector.shape_cast %170 : vector<1x4x16x16xf32> to vector<4x16x16xf32>
    %172 = vector.shape_cast %57 : vector<16x16xf32> to vector<1x16x16xf32>
    %173 = vector.shape_cast %113 : vector<4x16xf32> to vector<4x1x16xf32>
    %174 = vector.broadcast %172 : vector<1x16x16xf32> to vector<4x16x16xf32>
    %175 = vector.broadcast %173 : vector<4x1x16xf32> to vector<4x16x16xf32>
    %176 = arith.addf %174, %175 : vector<4x16x16xf32>
    %177 = vector.shape_cast %169 : vector<4x16xf32> to vector<4x16x1xf32>
    %178 = vector.broadcast %177 : vector<4x16x1xf32> to vector<4x16x16xf32>
    %179 = arith.addf %176, %178 : vector<4x16x16xf32>
    %180 = arith.mulf %171, %179 : vector<4x16x16xf32>
    %c0_174 = arith.constant 0 : index
    %c0_175 = arith.constant 0 : index
    %c0_176 = arith.constant 0 : index
    %c0_177 = arith.constant 0 : index
    %181 = vector.load %arg6[%c0_174, %c0_175, %c0_176, %c0_177] : memref<1x4x16x16xf32, #tpu.memory_space<vmem>>, vector<1x4x16x16xf32>
    %182 = vector.shape_cast %181 : vector<1x4x16x16xf32> to vector<4x16x16xf32>
    %183 = vector.shape_cast %180 : vector<4x16x16xf32> to vector<1x4x16x16xf32>
    tpu.vector_store %arg6[%c0_174, %c0_175, %c0_176, %c0_177], %183 {strides = array<i32>} : memref<1x4x16x16xf32, #tpu.memory_space<vmem>>, vector<1x4x16x16xf32>,
    return
  }
  func.func @transform_0(%arg0: i32) -> i32 {
    %c0_i32 = arith.constant 0 : i32
    %c0_i32_0 = arith.constant 0 : i32
    return %c0_i32 : i32
  }
  func.func @transform_1(%arg0: i32) -> (i32, i32, i32) {
    %c0_i32 = arith.constant 0 : i32
    %c0_i32_0 = arith.constant 0 : i32
    %c0_i32_1 = arith.constant 0 : i32
    %c0_i32_2 = arith.constant 0 : i32
    return %c0_i32, %c0_i32_0, %c0_i32_1 : i32, i32, i32
  }
  func.func @transform_2(%arg0: i32) -> (i32, i32, i32) {
    %c0_i32 = arith.constant 0 : i32
    %c0_i32_0 = arith.constant 0 : i32
    %c0_i32_1 = arith.constant 0 : i32
    %c0_i32_2 = arith.constant 0 : i32
    return %c0_i32, %c0_i32_0, %c0_i32_1 : i32, i32, i32
  }
  func.func @transform_3(%arg0: i32) -> (i32, i32, i32) {
    %c0_i32 = arith.constant 0 : i32
    %c0_i32_0 = arith.constant 0 : i32
    %c0_i32_1 = arith.constant 0 : i32
    %c0_i32_2 = arith.constant 0 : i32
    return %c0_i32, %c0_i32_0, %c0_i32_1 : i32, i32, i32
  }
  func.func @transform_4(%arg0: i32) -> (i32, i32, i32, i32) {
    %c0_i32 = arith.constant 0 : i32
    %c0_i32_0 = arith.constant 0 : i32
    %c0_i32_1 = arith.constant 0 : i32
    %c0_i32_2 = arith.constant 0 : i32
    return %arg0, %c0_i32, %c0_i32_0, %c0_i32_1 : i32, i32, i32, i32
  }
  func.func @transform_5(%arg0: i32) -> (i32, i32, i32, i32) {
    %c0_i32 = arith.constant 0 : i32
    %c0_i32_0 = arith.constant 0 : i32
    %c0_i32_1 = arith.constant 0 : i32
    %c0_i32_2 = arith.constant 0 : i32
    return %arg0, %c0_i32, %c0_i32_0, %c0_i32_1 : i32, i32, i32, i32
  }
}

</mosaic_0001>

<bundles_post_ra>
// kernel: triplet_attention.1
= control target key start
LH: loop header
LB: loop body
LE: loop exit
PB: predicated region body
PF: predicated region fallthrough
CT: control target
= control target key end

     0   :  { %10 = vsyncpa [#allocation7], 0  ;;  %s4002_s0 = inlined_call_operand.vmem [shape: f32[3], index: 0, kind: input, shape index: {}]   ;;  %s4003_s1 = inlined_call_operand.vmem [shape: f32[7,32,16], index: 1, kind: input, shape index: {}]   ;;  %s4004_s2 = inlined_call_operand.vmem [shape: f32[7,32,16], index: 2, kind: input, shape index: {}]   ;;  %s4005_s3 = inlined_call_operand.vmem [shape: f32[7,32,16], index: 3, kind: input, shape index: {}]   ;;  %s4006_s4 = inlined_call_operand.vmem [shape: f32[2,4,16,16], index: 4, kind: input, shape index: {}]   ;;  %s4007_s5 = inlined_call_operand.hbm [shape: f32[2,4,16,16], index: 5, kind: output, shape index: {}]  }
   0x1   :  { %11 = vsyncpa [#allocation6], 0 }
   0x2   :  { %13 = vsyncpa [#allocation6 + $0x1], 0  ;;  %s3335_s18 = smov 0   ;;  %s3337_s19 = smov 0  }
   0x3   :  { %s3339_s20 = smov 0   ;;  %s3341_s21 = smov 0  }
   0x4 LB: > { %s3356_s22 = sadd.s32 4294967295, %s3294_s21   ;;  %s2523_s23 = sadd.s32 4294967294, %s3294_s21   ;;  %s3294_s21 = sphi %s3341_s21, %s4014_s21   ;;  %s3290_s20 = sphi %s3339_s20, %s4013_s20   ;;  %s3286_s19 = sphi %s3337_s19, %s4012_s19   ;;  %s3282_s18 = sphi %s3335_s18, %s4011_s18  }
   0x5   : > { %s3360_s24 = sadd.s32 1, %s3294_s21   ;;  %s136_s25 = sadd.s32 1, %s3290_s20 }
   0x6   : > { %s133_s26 = ssub.s32 %s3294_s21, %s3360_s24  ;;  %p146_p0 = scmp.ne.s32.totalorder %s3290_s20, %s3286_s19 }
   0x7   : > { %p134_p1 = scmp.eq.s32.totalorder %s133_s26, 0  ;;  %p147_p2 = scmp.eq.s32.totalorder %s3356_s22, 1 }
   0x8   : > { %p152_p3 = scmp.ne.s32.totalorder %s3286_s19, %s3282_s18  ;;  %p153_p4 = scmp.eq.s32.totalorder %s2523_s23, 1 }
   0x9   : > { %s3371_s27 = scalar_select %p134_p1, %s3290_s20, %s136_s25  }
   0xa   : > { %p3373_p5 = por %p147_p2, %p146_p0  ;;  %p3377_p6 = por %p153_p4, %p152_p3 }
   0xb   : > { %p2524_p7 = scmp.ge.s32.totalorder %s3294_s21, 1  ;;  %p160_p8 = scmp.lt.s32.totalorder %s3294_s21, 3 }
   0xc   : > { %p3154_p9 = scmp.eq.s32.totalorder %s3356_s22, 0  ;;  %s173_s8 = sshll.u32 %s4002_s0, 4  ;;  %s174_s8 = int_to_ptr.vmem [resolvable:$true] %s173_s8 }
   0xd   : > { %p3384_p10 = pnand %p2524_p7, %p160_p8  ;;  %s3213_s9 = scalar_lea.vmem %s174_s8, 16 }
   0xe   : > { %p3214_p13 = scmp.ne.s32.totalorder %s174_s8, %s3213_s9  ;;  %p3221_p3 = scmp.lt.s32.totalorder %s174_s8, %s174_s8 }
   0xf   : > { %p3146_p11 = pneg %p3384_p10  ;;  %p3222_p4 = scmp.lt.s32.totalorder %s3213_s9, %s3213_s9 }
  0x11   : > { %p3147_p12 = pnand %p3154_p9, %p3146_p11  ;;  %p3223_p7 = por %p3222_p4, %p3221_p3 }
  0x13   : > { %p3215_p0 = pneg %p3147_p12 }
  0x15   : > { %p3216_p1 = pnand %p3215_p0, %p3214_p13 }
  0x17   : > { %p3217_p2 = pneg %p3216_p1 }
  0x19   : > { %p3224_p8 = pnand %p3223_p7, %p3217_p2 }
  0x1b   : > { %3227 = shalt.err (!%p3224_p8)
}
  0x1c   : > { %s3296_s10 = smov [#allocation5]   ;;  %203 = sbr.rel (%p3384_p10) target bundleno = 701 (0x2bd), region = 40 }
  0x1d   : > { %3149 = dma.vmem_to_smem (!%p3147_p12), %s174_s8, 16, %s3296_s10, [#allocation7]  }
  0x23   : > { %3273 = dma.done.wait (%p3154_p9), [#allocation7], 16  }
  0x24   : > { %3275 = vsyncadd (%p3154_p9), [#allocation7], 4294967280 }
  0x25   : > { %209 = sfence }
  0x26   : > { %p232_p11 = scmp.lt.s32.totalorder %s3356_s22, 1  ;;  %vm245_vm0 = vcmask 130048   ;;  %v2532_v0 = vld [vmem:[%s4003_s1 + $0x20] sm:$0xff]  ;;  %v2533_v1 = vld [vmem:[%s4003_s1 + $0x28] sm:$0xff]  ;;  %vm278_vm1 = vcmask 256000   ;;  %v3297_v12 = vmov 0.0  }
  0x27   : > { %v2988_v5 = vpack.c.bf16 %v2533_v1, %v2532_v0  ;;  %279 = vst.msk [vmem:[#allocation2] sm:$0x7] %vm278_vm1, %v3297_v12  ;;  %280 = vst.msk [vmem:[#allocation2 + $0x13] sm:$0x7] %vm278_vm1, %v3297_v12  ;;  %vm1005_vm2 = vcmask 1041409   ;;  %vm1007_vm3 = vcmask 1042434  }
  0x28   : > { %s233_s11 = scalar_select %p232_p11, %s3356_s22, 1  ;;  %999 = vst.msk [vmem:[#allocation3] sm:$0x7] %vm278_vm1, %v3297_v12  ;;  %1000 = vst.msk [vmem:[#allocation3 + $0x7] sm:$0x7] %vm278_vm1, %v3297_v12  ;;  %vm1009_vm4 = vcmask 1043459  }
  0x29   : > { %1633 = vst.msk [vmem:[#allocation4] sm:$0x7] %vm278_vm1, %v3297_v12  ;;  %1634 = vst.msk [vmem:[#allocation4 + $0x7] sm:$0x7] %vm278_vm1, %v3297_v12  ;;  %2989 = vmatprep.subr.bf16.mxu0 %v2988_v5  ;;  %s3298_s26 = smov 16   ;;  %vm3300_vm5 = vmmov 0  }
  0x2a   : > { %s2643_s12 = sshll.u32 %s233_s11, 6  ;;  %2991 = vmatpush3.bf16.msra.mxu0 %v2988_v5  ;;  %2842 = vmatprep.mubr.msk.f32.mxu1 %vm3300_vm5, %v3297_v12  ;;  %vm1012_vm6 = vcmask 125952   ;;  %vm291_vm7 = vcmask 261248   ;;  %vm307_vm8 = vcmask 261120   ;;  %vm1024_vm9 = vcmask 257152   ;;  %s277_s30 = sld [smem:[#allocation5]] }
  0x2b   : > { %s3406_s15 = scalar_lea.vmem %s4006_s4, %s2643_s12  ;;  %vm1654_vm10 = vcmask 130112   ;;  %vm1706_vm11 = vcmask 261312   ;;  %s2572_s6 = sld [smem:[#allocation5 + $0x1]] }
  0x2c   : > { %v237_v2 = vld [vmem:[%s3406_s15] sm:$0xff]  ;;  %v238_v3 = vld [vmem:[%s3406_s15 + $0x8] sm:$0xff]  ;;  %v239_v4 = vld [vmem:[%s3406_s15 + $0x10] sm:$0xff]  ;;  %s229_s7 = sand.u32 1, %s3286_s19   ;;  %s2644_s10 = sshll.u32 %s3356_s22, 10 }
  0x2d   : > { %v240_v6 = vld [vmem:[%s3406_s15 + $0x18] sm:$0xff]  ;;  %v3419_v7 = vld [vmem:[%s3406_s15 + $0x20] sm:$0xff]  ;;  %v242_v8 = vld [vmem:[%s3406_s15 + $0x28] sm:$0xff]  ;;  %v3423_v9 = vsel %vm245_vm0, %v237_v2, 0.0  ;;  %v3426_v10 = vsel %vm245_vm0, %v239_v4, 0.0  ;;  %v3429_v11 = vsel %vm245_vm0, %v238_v3, 0.0  ;;  %s3951_s14 = scalar_lea.hbm %s4007_s5, %s2644_s10 }
  0x2e   : > { %v3438_v13 = vld [vmem:[%s3406_s15 + $0x30] sm:$0xff]  ;;  %v3441_v14 = vld [vmem:[%s3406_s15 + $0x38] sm:$0xff]  ;;  %v262_v15 = vadd.f32 %v3426_v10, %v3423_v9  ;;  %v3447_v16 = vsel %vm245_vm0, %v3419_v7, 0.0  ;;  %v3450_v17 = vsel %vm245_vm0, %v240_v6, 0.0  ;;  %v3453_v18 = vsel %vm245_vm0, %v242_v8, 0.0  ;;  %s2529_s8 = sshll.u32 %s229_s7, 6 }
  0x2f   : > { %v3457_v19 = vsel %vm245_vm0, %v3438_v13, 0.0  ;;  %v3461_v20 = vsel %vm245_vm0, %v3441_v14, 0.0  ;;  %v965_v21 = vadd.f32 %v3429_v11, %v3423_v9  ;;  %v972_v22 = vadd.f32 %v3450_v17, %v3426_v10  ;;  %s3922_s9 = scalar_lea.vmem [#allocation8], %s2529_s8  ;;  %s3961_s22 = scalar_lea.sflag [#allocation6], %s229_s7 }
  0x30   : > { %v264_v23 = vadd.f32 %v3447_v16, %v262_v15  ;;  %v979_v24 = vadd.f32 %v3453_v18, %v3447_v16  ;;  %v986_v25 = vadd.f32 %v3461_v20, %v3457_v19  ;;  %v269_v26 = vadd.f32 %v3450_v17, %v3429_v11  ;;  %s2449_s11 = sshll.u32 %s3922_s9, 4  ;;  %s3302_s16 = smov [#allocation8]   ;;  %s3953_s11 = int_to_ptr.vmem [resolvable:$true] %s2449_s11 }
  0x31   : > { %v966_v27 = vrot.slane %v965_v21, 4  ;;  %v973_v28 = vrot.slane %v972_v22, 4  ;;  %v3475_v29 = vsel %vm245_vm0, %v238_v3, -inf  ;;  %v3478_v30 = vsel %vm245_vm0, %v237_v2, -inf  ;;  %s3232_s17 = sshll.u32 %s3302_s16, 4  ;;  %s3233_s17 = int_to_ptr.vmem [resolvable:$false] %s3232_s17 }
  0x32   : > { %v266_v31 = vadd.f32 %v3457_v19, %v264_v23  ;;  %v980_v32 = vrot.slane %v979_v24, 4  ;;  %v987_v33 = vrot.slane %v986_v25, 4  ;;  %v271_v34 = vadd.f32 %v3453_v18, %v269_v26  ;;  %s3234_s23 = scalar_lea.vmem %s3233_s17, 2048  ;;  %p3235_p13 = scmp.lt.s32.totalorder %s3953_s11, %s3233_s17 }
  0x33   : > { %v967_v35 = vadd.f32 %v966_v27, %v965_v21  ;;  %v974_v36 = vadd.f32 %v973_v28, %v972_v22  ;;  %v937_v37 = vmax.f32 %v3478_v30, %v3475_v29  ;;  %v3485_v38 = vsel %vm245_vm0, %v240_v6, -inf }
  0x34   : > { %v275_v39 = vmul.f32 0.25, %v266_v31  ;;  %v981_v40 = vadd.f32 %v980_v32, %v979_v24  ;;  %v988_v41 = vadd.f32 %v987_v33, %v986_v25  ;;  %v273_v42 = vadd.f32 %v3461_v20, %v271_v34  ;;  %v2534_v31 = vld [vmem:[%s4003_s1 + $0x30] sm:$0xff]  ;;  %v2535_v32 = vld [vmem:[%s4003_s1 + $0x38] sm:$0xff] }
  0x35   : > { %v968_v43 = vrot.slane %v967_v35, 2  ;;  %v975_v44 = vrot.slane %v974_v36, 2  ;;  %v938_v45 = vrot.slane %v937_v37, 4  ;;  %v3489_v46 = vsel %vm245_vm0, %v239_v4, -inf }
  0x36   : > { %285 = vrot.lane.b32.xlu0 %v275_v39, %s3298_s26  ;;  %v276_v47 = vmul.f32 0.25, %v273_v42  ;;  %v982_v48 = vrot.slane %v981_v40, 2  ;;  %v989_v49 = vrot.slane %v988_v41, 2  ;;  %v944_v50 = vmax.f32 %v3489_v46, %v3485_v38 }
  0x37   : > { %v969_v51 = vadd.f32 %v968_v43, %v967_v35  ;;  %v976_v52 = vadd.f32 %v975_v44, %v974_v36  ;;  %v939_v53 = vmax.f32 %v937_v37, %v938_v45  ;;  %v3495_v57 = vsel %vm245_vm0, %v242_v8, -inf }
  0x38   : > { %v983_v54 = vadd.f32 %v982_v48, %v981_v40  ;;  %v990_v55 = vadd.f32 %v989_v49, %v988_v41  ;;  %v945_v56 = vrot.slane %v944_v50, 4  ;;  %v3499_v61 = vsel %vm245_vm0, %v3419_v7, -inf  ;;  %v2573_v41 = vld [vmem:[%s4004_s2 + $0x20] sm:$0xff]  ;;  %v297_v48 = vld [vmem:[%s4003_s1 + $0x8] sm:$0xff] }
  0x39   : > { %v970_v58 = vrot.slane %v969_v51, 1  ;;  %v977_v59 = vrot.slane %v976_v52, 1  ;;  %v940_v60 = vrot.slane %v939_v53, 2  ;;  %v951_v1 = vmax.f32 %v3499_v61, %v3495_v57 }
  0x3a   : > { %287 = vrot.lane.b32.xlu0 %v276_v47, %s3298_s26  ;;  %v984_v62 = vrot.slane %v983_v54, 1  ;;  %v991_v63 = vrot.slane %v990_v55, 1  ;;  %v946_v0 = vmax.f32 %v944_v50, %v945_v56  ;;  %v256_v5 = vmax.f32 %v3475_v29, %v3495_v57  ;;  %v296_v47 = vld [vmem:[%s4003_s1] sm:$0xff] }
  0x3b   : > { %v971_v2 = vadd.f32 %v970_v58, %v969_v51  ;;  %v978_v3 = vadd.f32 %v977_v59, %v976_v52  ;;  %v941_v4 = vmax.f32 %v939_v53, %v940_v60  ;;  %v952_v21 = vrot.slane %v951_v1, 4  ;;  %v2575_v53 = vld [vmem:[%s4004_s2 + $0x30] sm:$0xff] }
  0x3c   : > { %v985_v6 = vadd.f32 %v984_v62, %v983_v54  ;;  %v992_v8 = vadd.f32 %v991_v63, %v990_v55  ;;  %v947_v15 = vrot.slane %v946_v0, 2  ;;  %v249_v23 = vmax.f32 %v3478_v30, %v3499_v61  ;;  %v2576_v54 = vld [vmem:[%s4004_s2 + $0x38] sm:$0xff] }
  0x3d   : > { %v994_v7 = vmul.f32 0.0625, %v971_v2  ;;  %v995_v22 = vmul.f32 0.0625, %v978_v3  ;;  %v3510_v24 = vsel %vm245_vm0, %v3441_v14, -inf  ;;  %v953_v28 = vmax.f32 %v951_v1, %v952_v21  ;;  %v2543_v21 = vld [vmem:[%s4003_s1 + $0x58] sm:$0xff] }
  0x3e   : > { %v996_v25 = vmul.f32 0.0625, %v985_v6  ;;  %v997_v26 = vmul.f32 0.0625, %v992_v8  ;;  %v948_v27 = vmax.f32 %v946_v0, %v947_v15  ;;  %v942_v34 = vrot.slane %v941_v4, 1  ;;  %v2542_v15 = vld [vmem:[%s4003_s1 + $0x50] sm:$0xff] }
  0x3f   : > { %v1018_v33 = vsel %vm1005_vm2, %v995_v22, %v994_v7  ;;  %v258_v35 = vmax.f32 %v3485_v38, %v3510_v24  ;;  %v250_v14 = vsel %vm245_vm0, %v3438_v13, -inf  ;;  %v954_v39 = vrot.slane %v953_v28, 2  ;;  %v2574_v13 = vld [vmem:[%s4004_s2 + $0x28] sm:$0xff] }
  0x40   : > { %v1019_v36 = vsel %vm1007_vm3, %v996_v25, %v1018_v33  ;;  %v949_v37 = vrot.slane %v948_v27, 1  ;;  %v251_v40 = vmax.f32 %v3489_v46, %v250_v14  ;;  %v958_v43 = vmax.f32 %v250_v14, %v3510_v24  ;;  %v2546_v25 = vld [vmem:[%s4003_s1 + $0x60] sm:$0xff] }
  0x41   : > { %v1020_v42 = vsel %vm1009_vm4, %v997_v26, %v1019_v36  ;;  %v259_v44 = vmax.f32 %v256_v5, %v258_v35  ;;  %v2992_v45 = vpack.c.bf16 %v2535_v32, %v2534_v31  ;;  %v955_v49 = vmax.f32 %v953_v28, %v954_v39  ;;  %v2547_v31 = vld [vmem:[%s4003_s1 + $0x68] sm:$0xff]  ;;  %v2579_v33 = vld [vmem:[%s4004_s2 + $0x40] sm:$0xff]  ;;  %v2549_v36 = vld [vmem:[%s4003_s1 + $0x78] sm:$0xff] }
  0x42   : > { %1021 = vrot.lane.b32.xlu1 %v1020_v42, %s3298_s26  ;;  %v252_v50 = vmax.f32 %v249_v23, %v251_v40  ;;  %v959_v51 = vrot.slane %v958_v43, 4  ;;  %v3299_v52 = vmov 0.0|0.0   ;;  %v3045_v56 = vpack.c.bf16 %v2574_v13, %v2573_v41  ;;  %v1029_v23 = vld [vmem:[%s4004_s2 + $0x10] sm:$0xff]  ;;  %v2582_v40 = vld [vmem:[%s4004_s2 + $0x58] sm:$0xff]  ;;  %v2552_v41 = vld [vmem:[%s4003_s1 + $0x80] sm:$0xff]  ;;  %s2605_s26 = sld [smem:[#allocation5 + $0x2]] }
  0x43   : > { %282 = vst.msk [vmem:[#allocation2 + $0xb] sm:$0xff] %vm245_vm0, %v259_v44  ;;  %2993 = vmatprep.subr.bf16.mxu0 %v2992_v45  ;;  %3044 = vmatprep.subr.bf16.mxu1 %v3299_v52  ;;  %v956_v55 = vrot.slane %v955_v49, 1  ;;  %v2996_v58 = vpack.c.bf16 %v297_v48, %v296_v47  ;;  %v943_v59 = vmax.f32 %v941_v4, %v942_v34  ;;  %v2580_v34 = vld [vmem:[%s4004_s2 + $0x48] sm:$0xff]  ;;  %v2581_v39 = vld [vmem:[%s4004_s2 + $0x50] sm:$0xff]  ;;  %v2584_v48 = vld [vmem:[%s4004_s2 + $0x60] sm:$0xff] }
  0x44   : > { %281 = vst.msk [vmem:[#allocation2 + $0x3] sm:$0xff] %vm245_vm0, %v252_v50  ;;  %2995 = vmatpush3.bf16.msra.mxu0 %v2992_v45  ;;  %v950_v60 = vmax.f32 %v948_v27, %v949_v37  ;;  %v960_v62 = vmax.f32 %v958_v43, %v959_v51  ;;  %3046 = vmatpush3.bf16.msra.mxu1 %v3045_v56  ;;  %v2553_v45 = vld [vmem:[%s4003_s1 + $0x88] sm:$0xff]  ;;  %v2554_v51 = vld [vmem:[%s4003_s1 + $0x90] sm:$0xff]  ;;  %v2587_v56 = vld [vmem:[%s4004_s2 + $0x78] sm:$0xff] }
  0x45   : > { %2997 = vmatprep.subr.bf16.mxu0 %v2996_v58  ;;  %v3048_v63 = vpack.c.bf16 %v2576_v54, %v2575_v53  ;;  %3047 = vmatprep.subr.bf16.mxu1 %v3299_v52  ;;  %v957_v1 = vmax.f32 %v955_v49, %v956_v55  ;;  %v3008_v28 = vpack.c.bf16 %v2543_v21, %v2542_v15  ;;  %v2585_v49 = vld [vmem:[%s4004_s2 + $0x68] sm:$0xff]  ;;  %v2555_v53 = vld [vmem:[%s4003_s1 + $0x98] sm:$0xff]  ;;  %v2586_v55 = vld [vmem:[%s4004_s2 + $0x70] sm:$0xff] }
  0x46   : > { %v961_v0 = vrot.slane %v960_v62, 2  ;;  %v1006_v3 = vsel %vm1005_vm2, %v950_v60, %v943_v59  ;;  %v3012_v35 = vpack.c.bf16 %v2547_v31, %v2546_v25  ;;  %v3057_v37 = vpack.c.bf16 %v2580_v34, %v2579_v33  ;;  %v2596_v21 = vld [vmem:[%s4004_s2 + $0xb0] sm:$0xff]  ;;  %v2606_v31 = vld [vmem:[%s4005_s3 + $0x20] sm:$0xff] }
  0x47   : > { %v1008_v4 = vsel %vm1007_vm3, %v957_v1, %v1006_v3  ;;  %v3060_v47 = vpack.c.bf16 %v2582_v40, %v2581_v39  ;;  %v3020_v50 = vpack.c.bf16 %v2553_v45, %v2552_v41  ;;  %v3063_v54 = vpack.c.bf16 %v2585_v49, %v2584_v48  ;;  %v2590_v3 = vld [vmem:[%s4004_s2 + $0x88] sm:$0xff]  ;;  %v2601_v34 = vld [vmem:[%s4004_s2 + $0xd0] sm:$0xff]  ;;  %v2609_v40 = vld [vmem:[%s4005_s3 + $0x38] sm:$0xff] }
  0x48   : > { %v962_v2 = vmax.f32 %v960_v62, %v961_v0  ;;  %3049 = vmatpush3.bf16.msra.mxu1 %v3048_v63  ;;  %v3024_v62 = vpack.c.bf16 %v2555_v53, %v2554_v51  ;;  %v2559_v63 = vld [vmem:[%s4003_s1 + $0xa8] sm:$0xff]  ;;  %v3066_v1 = vpack.c.bf16 %v2587_v56, %v2586_v55  ;;  %v1743_v48 = vld [vmem:[%s4005_s3 + $0x10] sm:$0xff]  ;;  %v1744_v49 = vld [vmem:[%s4005_s3 + $0x18] sm:$0xff] }
  0x49   : > { %3050 = vmatprep.subr.bf16.mxu1 %v3299_v52  ;;  %v3096_v53 = vpack.c.bf16 %v1744_v49, %v1743_v48 }
  0x4a   : > { %v963_v5 = vrot.slane %v962_v2, 1 }
  0x4c   : > { %v964_v6 = vmax.f32 %v962_v2, %v963_v5  ;;  %v2589_v2 = vld [vmem:[%s4004_s2 + $0x80] sm:$0xff] }
  0x4e   : > { %v1010_v8 = vsel %vm1009_vm4, %v964_v6, %v1008_v4  ;;  %v2560_v4 = vld [vmem:[%s4003_s1 + $0xb0] sm:$0xff]  ;;  %v2561_v6 = vld [vmem:[%s4003_s1 + $0xb8] sm:$0xff] }
  0x4f   : > { %1013 = vst.msk [vmem:[#allocation3 + $0x3] sm:$0xf] %vm1012_vm6, %v1010_v8  ;;  %v3069_v8 = vpack.c.bf16 %v2590_v3, %v2589_v2 }
  0x59   : > { %1610 = vadd.xlane.f32.xlu0 %v3429_v11 }
  0x5d   : > { %1612 = vadd.xlane.f32.xlu0 %v3426_v10 }
  0x61   : > { %1592 = vmax.xlane.f32.xlu0 %v3478_v30  ;;  %v2540_v30 = vld [vmem:[%s4003_s1 + $0x40] sm:$0xff] }
  0x65   : > { %1596 = vmax.xlane.f32.xlu0 %v3489_v46  ;;  %v1027_v46 = vld [vmem:[%s4004_s2] sm:$0xff] }
  0x66   : > { %1608 = vadd.xlane.f32.xlu1 %v3423_v9 }
  0x69   : > { %1616 = vadd.xlane.f32.xlu0 %v3447_v16  ;;  %v298_v16 = vld [vmem:[%s4003_s1 + $0x10] sm:$0xff] }
  0x6a   : > { %1614 = vadd.xlane.f32.xlu1 %v3450_v17  ;;  %v299_v17 = vld [vmem:[%s4003_s1 + $0x18] sm:$0xff] }
  0x6d   : > { %1600 = vmax.xlane.f32.xlu0 %v3499_v61 }
  0x6e   : > { %1594 = vmax.xlane.f32.xlu1 %v3475_v29 }
  0x71   : > { %1620 = vadd.xlane.f32.xlu0 %v3457_v19 }
  0x72   : > { %1598 = vmax.xlane.f32.xlu1 %v3485_v38  ;;  %v2541_v38 = vld [vmem:[%s4003_s1 + $0x48] sm:$0xff] }
  0x73   : > { %v3004_v61 = vpack.c.bf16 %v2541_v38, %v2540_v30  ;;  %v2594_v30 = vld [vmem:[%s4004_s2 + $0xa0] sm:$0xff]  ;;  %v2595_v38 = vld [vmem:[%s4004_s2 + $0xa8] sm:$0xff] }
  0x74   : > { %v3075_v15 = vpack.c.bf16 %v2595_v38, %v2594_v30 }
  0x75   : > { %1604 = vmax.xlane.f32.xlu0 %v250_v14  ;;  %v2548_v14 = vld [vmem:[%s4003_s1 + $0x70] sm:$0xff] }
  0x76   : > { %1618 = vadd.xlane.f32.xlu1 %v3453_v18  ;;  %v3000_v18 = vpack.c.bf16 %v299_v17, %v298_v16  ;;  %v3016_v44 = vpack.c.bf16 %v2549_v36, %v2548_v14  ;;  %v2608_v36 = vld [vmem:[%s4005_s3 + $0x30] sm:$0xff] }
  0x77   : > { %v3090_v45 = vpack.c.bf16 %v2609_v40, %v2608_v36 }
  0x7a   : > { %1602 = vmax.xlane.f32.xlu1 %v3495_v57  ;;  %v1028_v57 = vld [vmem:[%s4004_s2 + $0x8] sm:$0xff] }
  0x7b   : > { %v3051_v7 = vpack.c.bf16 %v1028_v57, %v1027_v46  ;;  %v2566_v57 = vld [vmem:[%s4003_s1 + $0xd0] sm:$0xff] }
  0x7e   : > { %1622 = vadd.xlane.f32.xlu1 %v3461_v20 }
  0x82   : > { %1606 = vmax.xlane.f32.xlu1 %v3510_v24  ;;  %v1030_v24 = vld [vmem:[%s4004_s2 + $0x18] sm:$0xff] }
  0x83   : > { %v3054_v32 = vpack.c.bf16 %v1030_v24, %v1029_v23 }
  0xa8   : > { %v286_v9 = vpop.permute.xlu0 %285 }
  0xa9   : > { %292 = vst.msk [vmem:[#allocation2 + $0x3] sm:$0xff] %vm291_vm7, %v286_v9  ;;  %v2591_v9 = vld [vmem:[%s4004_s2 + $0x90] sm:$0xff] }
  0xac   : > { %v288_v10 = vpop.permute.xlu0 %287 }
  0xad   : > { %293 = vst.msk [vmem:[#allocation2 + $0xb] sm:$0xff] %vm291_vm7, %v288_v10  ;;  %v2592_v10 = vld [vmem:[%s4004_s2 + $0x98] sm:$0xff] }
  0xb0   : > { %v300_v11 = vld [vmem:[#allocation2 + $0x1] sm:$0xff] }
  0xb1   : > { %2765 = vmatprep.mubr.msk.f32.mxu0 %vm307_vm8, %v300_v11  ;;  %v294_v19 = vld [vmem:[#allocation2] sm:$0xff] }
  0xb2   : > { %v470_v27 = vld [vmem:[#allocation2 + $0x2] sm:$0xff] }
  0xb3   : > { %v560_v13 = vld [vmem:[#allocation2 + $0x3] sm:$0xff] }
  0xb4   : > { %v1022_v20 = vpop.permute.xlu1 %1021  ;;  %v301_v29 = vld [vmem:[#allocation2 + $0x9] sm:$0xff]  ;;  %v2564_v11 = vld [vmem:[%s4003_s1 + $0xc0] sm:$0xff] }
  0xb5   : > { %1025 = vst.msk [vmem:[#allocation3 + $0x3] sm:$0xf] %vm1024_vm9, %v1022_v20  ;;  %2766 = vmatmul.mubr.msk.f32.vlgmr.msra.gmra.mrb[0].mxu0 %vm307_vm8, %v301_v29  ;;  %v295_v22 = vld [vmem:[#allocation2 + $0x8] sm:$0xff]  ;;  %v3072_v29 = vpack.c.bf16 %v2592_v10, %v2591_v9 }
  0xb6   : > { %2999 = vmatpush3.bf16.msra.mxu0 %v2996_v58  ;;  %2776 = vmatprep.mubr.msk.f32.mxu0 %vm307_vm8, %v294_v19  ;;  %v471_v43 = vld [vmem:[#allocation2 + $0xa] sm:$0xff]  ;;  %v2558_v58 = vld [vmem:[%s4003_s1 + $0xa0] sm:$0xff] }
  0xb7   : > { %3001 = vmatprep.subr.bf16.mxu0 %v3000_v18  ;;  %v561_v60 = vld [vmem:[#allocation2 + $0xb] sm:$0xff]  ;;  %v3028_v5 = vpack.c.bf16 %v2559_v63, %v2558_v58 }
  0xb8   : > { %v650_v0 = vld [vmem:[#allocation2 + $0x4] sm:$0xff]  ;;  %v651_v17 = vld [vmem:[#allocation2 + $0xc] sm:$0xff] }
  0xb9   : > { %v2565_v19 = vld [vmem:[%s4003_s1 + $0xc8] sm:$0xff] }
  0xba   : > { %3003 = vmatpush3.bf16.msra.mxu0 %v3000_v18  ;;  %v3032_v18 = vpack.c.bf16 %v2561_v6, %v2560_v4  ;;  %v740_v20 = vld [vmem:[#allocation2 + $0x5] sm:$0xff]  ;;  %v3036_v46 = vpack.c.bf16 %v2565_v19, %v2564_v11  ;;  %v741_v23 = vld [vmem:[#allocation2 + $0xd] sm:$0xff] }
  0xbb   : > { %3005 = vmatprep.subr.bf16.mxu0 %v3004_v61  ;;  %v830_v25 = vld [vmem:[#allocation2 + $0x6] sm:$0xff]  ;;  %v831_v39 = vld [vmem:[#allocation2 + $0xe] sm:$0xff] }
  0xbc   : > { %v1031_v26 = vld [vmem:[#allocation3 + $0x1] sm:$0xf] }
  0xbd   : > { %2843 = vmatmul.mubr.msk.f32.vlgmr.msra.gmra.mrb[0].mxu1 %vm307_vm8, %v1031_v26  ;;  %2777 = vmatmul.mubr.msk.f32.vlgmr.msra.gmra.mrb[0].mxu0 %vm307_vm8, %v295_v22  ;;  %v1026_v42 = vld [vmem:[#allocation3] sm:$0xf]  ;;  %v1343_v22 = vld [vmem:[#allocation3 + $0x4] sm:$0xf] }
  0xbe   : > { %3052 = vmatpush3.bf16.msra.mxu1 %v3051_v7  ;;  %3007 = vmatpush3.bf16.msra.mxu0 %v3004_v61  ;;  %v1183_v59 = vld [vmem:[#allocation3 + $0x2] sm:$0xf] }
  0xbf   : > { %2787 = vmatprep.mubr.msk.f32.mxu0 %vm307_vm8, %v470_v27  ;;  %3053 = vmatprep.subr.bf16.mxu1 %v3299_v52  ;;  %v1263_v16 = vld [vmem:[#allocation3 + $0x3] sm:$0xf]  ;;  %v2599_v27 = vld [vmem:[%s4004_s2 + $0xc0] sm:$0xff] }
  0xc0   : > { %3009 = vmatprep.subr.bf16.mxu0 %v3008_v28  ;;  %2853 = vmatprep.mubr.msk.f32.mxu1 %vm3300_vm5, %v3297_v12  ;;  %v2567_v61 = vld [vmem:[%s4003_s1 + $0xd8] sm:$0xff] }
  0xc1   : > { %v2597_v7 = vld [vmem:[%s4004_s2 + $0xb8] sm:$0xff]  ;;  %v3040_v24 = vpack.c.bf16 %v2567_v61, %v2566_v57 }
  0xc2   : > { %3055 = vmatpush3.bf16.msra.mxu1 %v3054_v32  ;;  %3011 = vmatpush3.bf16.msra.mxu0 %v3008_v28  ;;  %v3078_v26 = vpack.c.bf16 %v2597_v7, %v2596_v21  ;;  %v2600_v28 = vld [vmem:[%s4004_s2 + $0xc8] sm:$0xff] }
  0xc3   : > { %3056 = vmatprep.subr.bf16.mxu1 %v3299_v52  ;;  %3013 = vmatprep.subr.bf16.mxu0 %v3012_v35  ;;  %v2607_v32 = vld [vmem:[%s4005_s3 + $0x28] sm:$0xff]  ;;  %v3081_v33 = vpack.c.bf16 %v2600_v28, %v2599_v27 }
  0xc4   : > { %v3087_v14 = vpack.c.bf16 %v2607_v32, %v2606_v31 }
  0xc5   : > { %2854 = vmatmul.mubr.msk.f32.vlgmr.msra.gmra.mrb[2].mxu1 %vm307_vm8, %v1026_v42  ;;  %2788 = vmatmul.mubr.msk.f32.vlgmr.msra.gmra.mrb[0].mxu0 %vm307_vm8, %v471_v43  ;;  %v1741_v43 = vld [vmem:[%s4005_s3] sm:$0xff] }
  0xc6   : > { %3058 = vmatpush3.bf16.msra.mxu1 %v3057_v37  ;;  %3015 = vmatpush3.bf16.msra.mxu0 %v3012_v35  ;;  %v2602_v35 = vld [vmem:[%s4004_s2 + $0xd8] sm:$0xff] }
  0xc7   : > { %2798 = vmatprep.mubr.msk.f32.mxu0 %vm307_vm8, %v560_v13  ;;  %3059 = vmatprep.subr.bf16.mxu1 %v3299_v52  ;;  %v1423_v37 = vld [vmem:[#allocation3 + $0x5] sm:$0xf]  ;;  %v3084_v41 = vpack.c.bf16 %v2602_v35, %v2601_v34 }
  0xc8   : > { %3017 = vmatprep.subr.bf16.mxu0 %v3016_v44  ;;  %2864 = vmatprep.mubr.msk.f32.mxu1 %vm3300_vm5, %v3297_v12 }
  0xca   : > { %3061 = vmatpush3.bf16.msra.mxu1 %v3060_v47  ;;  %3019 = vmatpush3.bf16.msra.mxu0 %v3016_v44  ;;  %v1742_v44 = vld [vmem:[%s4005_s3 + $0x8] sm:$0xff] }
  0xcb   : > { %3062 = vmatprep.subr.bf16.mxu1 %v3299_v52  ;;  %3021 = vmatprep.subr.bf16.mxu0 %v3020_v50  ;;  %v3093_v47 = vpack.c.bf16 %v1742_v44, %v1741_v43 }
  0xcd   : > { %2865 = vmatmul.mubr.msk.f32.vlgmr.msra.gmra.mrb[4].mxu1 %vm307_vm8, %v1183_v59  ;;  %2799 = vmatmul.mubr.msk.f32.vlgmr.msra.gmra.mrb[0].mxu0 %vm307_vm8, %v561_v60  ;;  %v1643_v60 = vlaneseq }
  0xce   : > { %3064 = vmatpush3.bf16.msra.mxu1 %v3063_v54  ;;  %3023 = vmatpush3.bf16.msra.mxu0 %v3020_v50  ;;  %v1503_v50 = vld [vmem:[#allocation3 + $0x6] sm:$0xf] }
  0xcf   : > { %2809 = vmatprep.mubr.msk.f32.mxu0 %vm307_vm8, %v650_v0  ;;  %3065 = vmatprep.subr.bf16.mxu1 %v3299_v52  ;;  %v1644_v0 = vand.u32 127, %v1643_v60  ;;  %v3789_v2 = vshrl.u32 %v1643_v60, 7  ;;  %v2614_v60 = vld [vmem:[%s4005_s3 + $0x50] sm:$0xff] }
  0xd0   : > { %3025 = vmatprep.subr.bf16.mxu0 %v3024_v62  ;;  %2875 = vmatprep.mubr.msk.f32.mxu1 %vm3300_vm5, %v3297_v12 }
  0xd1   : > { %v1696_v3 = vadd.s32 4294967280, %v1644_v0  ;;  %v1701_v4 = vadd.s32 4294967272, %v1644_v0  ;;  %v1647_v10 = vsub.s32 %v1644_v0, %v3789_v2 }
  0xd2   : > { %3067 = vmatpush3.bf16.msra.mxu1 %v3066_v1  ;;  %3027 = vmatpush3.bf16.msra.mxu0 %v3024_v62 }
  0xd3   : > { %3068 = vmatprep.subr.bf16.mxu1 %v3299_v52  ;;  %3029 = vmatprep.subr.bf16.mxu0 %v3028_v5 }
  0xd5   : > { %2876 = vmatmul.mubr.msk.f32.vlgmr.msra.gmra.mrb[6].mxu1 %vm307_vm8, %v1263_v16  ;;  %2810 = vmatmul.mubr.msk.f32.vlgmr.msra.gmra.mrb[0].mxu0 %vm307_vm8, %v651_v17  ;;  %v1699_v16 = vsub.s32 %v1696_v3, %v3789_v2 }
  0xd6   : > { %3070 = vmatpush3.bf16.msra.mxu1 %v3069_v8  ;;  %3031 = vmatpush3.bf16.msra.mxu0 %v3028_v5  ;;  %v1649_v5 = vadd.s32 4294967288, %v1644_v0  ;;  %v2620_v0 = vld [vmem:[%s4005_s3 + $0x78] sm:$0xff] }
  0xd7   : > { %2820 = vmatprep.mubr.msk.f32.mxu0 %vm307_vm8, %v740_v20  ;;  %3071 = vmatprep.subr.bf16.mxu1 %v3299_v52 }
  0xd8   : > { %3033 = vmatprep.subr.bf16.mxu0 %v3032_v18  ;;  %2886 = vmatprep.mubr.msk.f32.mxu1 %vm3300_vm5, %v3297_v12  ;;  %v1652_v17 = vsub.s32 %v1649_v5, %v3789_v2 }
  0xda   : > { %3073 = vmatpush3.bf16.msra.mxu1 %v3072_v29  ;;  %3035 = vmatpush3.bf16.msra.mxu0 %v3032_v18  ;;  %v1704_v29 = vsub.s32 %v1701_v4, %v3789_v2 }
  0xdb   : > { %3074 = vmatprep.subr.bf16.mxu1 %v3299_v52  ;;  %3037 = vmatprep.subr.bf16.mxu0 %v3036_v46 }
  0xdd   : > { %2887 = vmatmul.mubr.msk.f32.vlgmr.msra.gmra.mrb[8].mxu1 %vm307_vm8, %v1343_v22  ;;  %2821 = vmatmul.mubr.msk.f32.vlgmr.msra.gmra.mrb[0].mxu0 %vm307_vm8, %v741_v23 }
  0xde   : > { %3076 = vmatpush3.bf16.msra.mxu1 %v3075_v15  ;;  %3039 = vmatpush3.bf16.msra.mxu0 %v3036_v46 }
  0xdf   : > { %2831 = vmatprep.mubr.msk.f32.mxu0 %vm307_vm8, %v830_v25  ;;  %3077 = vmatprep.subr.bf16.mxu1 %v3299_v52 }
  0xe0   : > { %3041 = vmatprep.subr.bf16.mxu0 %v3040_v24  ;;  %2897 = vmatprep.mubr.msk.f32.mxu1 %vm3300_vm5, %v3297_v12 }
  0xe2   : > { %3079 = vmatpush3.bf16.msra.mxu1 %v3078_v26  ;;  %3043 = vmatpush3.bf16.msra.mxu0 %v3040_v24 }
  0xe3   : > { %3080 = vmatprep.subr.bf16.mxu1 %v3299_v52  ;;  %3086 = vmatprep.subr.bf16.mxu0 %v3299_v52 }
  0xe5   : > { %2898 = vmatmul.mubr.msk.f32.vlgmr.msra.gmra.mrb[10].mxu1 %vm307_vm8, %v1423_v37  ;;  %2832 = vmatmul.mubr.msk.f32.vlgmr.msra.gmra.mrb[0].mxu0 %vm307_vm8, %v831_v39 }
  0xe6   : > { %3082 = vmatpush3.bf16.msra.mxu1 %v3081_v33  ;;  %2908 = vmatprep.mubr.msk.f32.mxu1 %vm3300_vm5, %v3297_v12  ;;  %v1611_v42 = vpop.xlane.xlu0 %1610 }
  0xe7   : > { %3083 = vmatprep.subr.bf16.mxu1 %v3299_v52  ;;  %3088 = vmatpush3.bf16.msra.mxu0 %v3087_v14  ;;  %v1625_v30 = vmul.f32 0.0625, %v1611_v42 }
  0xe8   : > { %3089 = vmatprep.subr.bf16.mxu0 %v3299_v52  ;;  %2919 = vmatprep.mubr.msk.f32.mxu0 %vm3300_vm5, %v3297_v12 }
  0xe9   : > { %v1705_v32 = vrot.slane %v1625_v30, %v1704_v29 }
  0xea   : > { %3085 = vmatpush3.bf16.msra.mxu1 %v3084_v41  ;;  %v1613_v13 = vpop.xlane.xlu0 %1612 }
  0xeb   : > { %3092 = vmatprep.subr.bf16.mxu1 %v3299_v52  ;;  %3091 = vmatpush3.bf16.msra.mxu0 %v3090_v45  ;;  %v1626_v8 = vmul.f32 0.0625, %v1613_v13 }
  0xec   : > { %3098 = vmatprep.subr.bf16.mxu0 %v3299_v52 }
  0xed   : > { %2909 = vmatmul.mubr.msk.f32.vlgmr.msra.gmra.mrb[12].mxu1 %vm307_vm8, %v1503_v50  ;;  %v1711_v46 = vrot.slane %v1626_v8, %v1699_v16  ;;  %v2623_v8 = vld [vmem:[%s4005_s3 + $0x88] sm:$0xff] }
  0xee   : > { %v1593_v51 = vpop.xlane.xlu0 %1592  ;;  %3094 = vmatpush3.bf16.msra.mxu1 %v3093_v47  ;;  %2930 = vmatprep.mubr.msk.f32.mxu1 %vm3300_vm5, %v3297_v12 }
  0xef   : > { %3095 = vmatprep.subr.bf16.mxu1 %v3299_v52  ;;  %v1648_v21 = vrot.slane %v1593_v51, %v1647_v10 }
  0xf2   : > { %3097 = vmatpush3.bf16.msra.mxu1 %v3096_v53  ;;  %v1597_v55 = vpop.xlane.xlu0 %1596  ;;  %v2612_v53 = vld [vmem:[%s4005_s3 + $0x40] sm:$0xff] }
  0xf3   : > { %v1609_v54 = vpop.xlane.xlu1 %1608  ;;  %3104 = vmatprep.subr.bf16.mxu1 %v3299_v52  ;;  %v1659_v61 = vrot.slane %v1597_v55, %v1647_v10  ;;  %v2617_v55 = vld [vmem:[%s4005_s3 + $0x60] sm:$0xff] }
  0xf4   : > { %v1624_v20 = vmul.f32 0.0625, %v1609_v54  ;;  %v2613_v54 = vld [vmem:[%s4005_s3 + $0x48] sm:$0xff] }
  0xf6   : > { %v1617_v58 = vpop.xlane.xlu0 %1616  ;;  %v1700_v31 = vrot.slane %v1624_v20, %v1699_v16  ;;  %v2630_v20 = vld [vmem:[%s4005_s3 + $0xb8] sm:$0xff] }
  0xf7   : > { %v1615_v56 = vpop.xlane.xlu1 %1614  ;;  %v1628_v19 = vmul.f32 0.0625, %v1617_v58  ;;  %v3099_v58 = vpack.c.bf16 %v2613_v54, %v2612_v53 }
  0xf8   : > { %v1627_v9 = vmul.f32 0.0625, %v1615_v56  ;;  %v1707_v43 = vsel %vm1706_vm11, %v1705_v32, %v1700_v31  ;;  %v2618_v56 = vld [vmem:[%s4005_s3 + $0x68] sm:$0xff] }
  0xf9   : > { %v1720_v27 = vrot.slane %v1628_v19, %v1699_v16  ;;  %v2629_v19 = vld [vmem:[%s4005_s3 + $0xb0] sm:$0xff] }
  0xfa   : > { %v1601_v63 = vpop.xlane.xlu0 %1600  ;;  %v1715_v15 = vrot.slane %v1627_v9, %v1704_v29  ;;  %v2627_v9 = vld [vmem:[%s4005_s3 + $0xa0] sm:$0xff] }
  0xfb   : > { %v1595_v59 = vpop.xlane.xlu1 %1594  ;;  %v1668_v22 = vrot.slane %v1601_v63, %v1647_v10  ;;  %v2619_v63 = vld [vmem:[%s4005_s3 + $0x70] sm:$0xff] }
  0xfc   : > { %v1653_v25 = vrot.slane %v1595_v59, %v1652_v17  ;;  %v1716_v36 = vsel %vm1706_vm11, %v1715_v15, %v1711_v46  ;;  %v3105_v59 = vpack.c.bf16 %v2618_v56, %v2617_v55  ;;  %v3108_v4 = vpack.c.bf16 %v2620_v0, %v2619_v63 }
  0xfd   : > { %v1735_v13 = vsel %vm1005_vm2, %v1716_v36, %v1707_v43  ;;  %v3120_v46 = vpack.c.bf16 %v2630_v20, %v2629_v19 }
  0xfe   : > { %v1621_v6 = vpop.xlane.xlu0 %1620  ;;  %v1655_v40 = vsel %vm1654_vm10, %v1653_v25, %v1648_v21  ;;  %v2634_v21 = vld [vmem:[%s4005_s3 + $0xd0] sm:$0xff] }
  0xff   : > { %v1599_v62 = vpop.xlane.xlu1 %1598  ;;  %v1630_v38 = vmul.f32 0.0625, %v1621_v6  ;;  %v2622_v6 = vld [vmem:[%s4005_s3 + $0x80] sm:$0xff] }
 0x100   : > { %v1663_v57 = vrot.slane %v1599_v62, %v1652_v17  ;;  %v2615_v62 = vld [vmem:[%s4005_s3 + $0x58] sm:$0xff] }
 0x101   : > { %v1729_v33 = vrot.slane %v1630_v38, %v1699_v16  ;;  %v3102_v5 = vpack.c.bf16 %v2615_v62, %v2614_v60 }
 0x102   : > { %v1605_v24 = vpop.xlane.xlu0 %1604  ;;  %v1664_v34 = vsel %vm1654_vm10, %v1663_v57, %v1659_v61  ;;  %v2632_v57 = vld [vmem:[%s4005_s3 + $0xc0] sm:$0xff]  ;;  %v2633_v61 = vld [vmem:[%s4005_s3 + $0xc8] sm:$0xff] }
 0x103   : > { %v1619_v1 = vpop.xlane.xlu1 %1618  ;;  %v1677_v14 = vrot.slane %v1605_v24, %v1647_v10  ;;  %v1683_v44 = vsel %vm1005_vm2, %v1664_v34, %v1655_v40  ;;  %v2628_v10 = vld [vmem:[%s4005_s3 + $0xa8] sm:$0xff]  ;;  %v3123_v15 = vpack.c.bf16 %v2633_v61, %v2632_v57 }
 0x104   : > { %v1629_v18 = vmul.f32 0.0625, %v1619_v1  ;;  %v3117_v16 = vpack.c.bf16 %v2628_v10, %v2627_v9  ;;  %v2341_v10 = vsub.s32 0, %v3789_v2 }
 0x106   : > { %v1724_v26 = vrot.slane %v1629_v18, %v1704_v29  ;;  %v2625_v18 = vld [vmem:[%s4005_s3 + $0x98] sm:$0xff] }
 0x107   : > { %v1603_v11 = vpop.xlane.xlu1 %1602 }
 0x108   : > { %v1672_v7 = vrot.slane %v1603_v11, %v1652_v17  ;;  %v1725_v41 = vsel %vm1706_vm11, %v1724_v26, %v1720_v27  ;;  %v3111_v11 = vpack.c.bf16 %v2623_v8, %v2622_v6 }
 0x109   : > { %v1736_v49 = vsel %vm1007_vm3, %v1725_v41, %v1735_v13 }
 0x10a   : > { %v1673_v37 = vsel %vm1654_vm10, %v1672_v7, %v1668_v22  ;;  %v2635_v7 = vld [vmem:[%s4005_s3 + $0xd8] sm:$0xff] }
 0x10b   : > { %v1623_v23 = vpop.xlane.xlu1 %1622  ;;  %v1684_v47 = vsel %vm1007_vm3, %v1673_v37, %v1683_v44  ;;  %v3126_v24 = vpack.c.bf16 %v2635_v7, %v2634_v21 }
 0x10c   : > { %v1631_v28 = vmul.f32 0.0625, %v1623_v23 }
 0x10e   : > { %v1733_v35 = vrot.slane %v1631_v28, %v1704_v29 }
 0x10f   : > { %v1607_v39 = vpop.xlane.xlu1 %1606 }
 0x110   : > { %v1681_v42 = vrot.slane %v1607_v39, %v1652_v17  ;;  %v1734_v45 = vsel %vm1706_vm11, %v1733_v35, %v1729_v33  ;;  %v2624_v17 = vld [vmem:[%s4005_s3 + $0x90] sm:$0xff] }
 0x111   : > { %v1737_v51 = vsel %vm1009_vm4, %v1734_v45, %v1736_v49  ;;  %v3114_v38 = vpack.c.bf16 %v2625_v18, %v2624_v17  ;;  %v920_v45 = vstv %s277_s30  ;;  %v1583_v49 = vstv %s2572_s6 }
 0x112   : > { %v1682_v48 = vsel %vm1654_vm10, %v1681_v42, %v1677_v14 }
 0x113   : > { %v1685_v50 = vsel %vm1009_vm4, %v1682_v48, %v1684_v47 }
 0x114   : > { %1687 = vst.msk [vmem:[#allocation4 + $0x3] sm:$0xf] %vm1012_vm6, %v1685_v50 }
 0x115   : > { %1739 = vst.msk [vmem:[#allocation4 + $0x3] sm:$0xf] %vm1024_vm9, %v1737_v51 }
 0x11c   : > { %v1745_v1 = vld [vmem:[#allocation4 + $0x1] sm:$0xf]  ;;  %v2137_v23 = vld [vmem:[#allocation4 + $0x5] sm:$0xf] }
 0x11d   : > { %v1740_v3 = vld [vmem:[#allocation4] sm:$0xf]  ;;  %2920 = vmatmul.mubr.msk.f32.vlgmr.msra.gmra.mrb[2].mxu0 %vm307_vm8, %v1745_v1  ;;  %v2057_v22 = vld [vmem:[#allocation4 + $0x4] sm:$0xf]  ;;  %v3301_v1 = vmov 1966171168  }
 0x11e   : > { %2931 = vmatmul.mubr.msk.f32.vlgmr.msra.gmra.mrb[14].mxu1 %vm307_vm8, %v1740_v3  ;;  %3100 = vmatpush3.bf16.msra.mxu0 %v3099_v58  ;;  %v1897_v29 = vld [vmem:[#allocation4 + $0x2] sm:$0xf]  ;;  %v2217_v25 = vld [vmem:[#allocation4 + $0x6] sm:$0xf]  ;;  %v2316_v3 = vunpack.c.l.s4 %v3301_v1 }
 0x11f   : > { %3106 = vmatpush3.bf16.msra.mxu1 %v3105_v59  ;;  %3101 = vmatprep.subr.bf16.mxu0 %v3299_v52  ;;  %v1977_v30 = vld [vmem:[#allocation4 + $0x3] sm:$0xf] }
 0x120   : > { %3107 = vmatprep.subr.bf16.mxu1 %v3299_v52  ;;  %2941 = vmatprep.mubr.msk.f32.mxu0 %vm3300_vm5, %v3297_v12  ;;  %v2307_v1 = vld [vmem:[%s3406_s15 + $0x8] sm:$0xff] }
 0x121   : > { %2952 = vmatprep.mubr.msk.f32.mxu1 %vm3300_vm5, %v3297_v12 }
 0x122   : > { %3103 = vmatpush3.bf16.msra.mxu0 %v3102_v5  ;;  %v2317_v5 = vunpack.c.0.s8 %v2316_v3 }
 0x123   : > { %3109 = vmatpush3.bf16.msra.mxu1 %v3108_v4  ;;  %3110 = vmatprep.subr.bf16.mxu0 %v3299_v52 }
 0x124   : > { %3116 = vmatprep.subr.bf16.mxu1 %v3299_v52  ;;  %v2320_v4 = vsub.s32 %v2317_v5, %v3789_v2  ;;  %v2306_v5 = vld [vmem:[%s3406_s15] sm:$0xff] }
 0x125   : > { %2942 = vmatmul.mubr.msk.f32.vlgmr.msra.gmra.mrb[4].mxu0 %vm307_vm8, %v1897_v29 }
 0x126   : > { %2953 = vmatmul.mubr.msk.f32.vlgmr.msra.gmra.mrb[16].mxu1 %vm307_vm8, %v1977_v30  ;;  %3112 = vmatpush3.bf16.msra.mxu0 %v3111_v11 }
 0x127   : > { %3118 = vmatpush3.bf16.msra.mxu1 %v3117_v16  ;;  %3113 = vmatprep.subr.bf16.mxu0 %v3299_v52 }
 0x128   : > { %3119 = vmatprep.subr.bf16.mxu1 %v3299_v52  ;;  %2963 = vmatprep.mubr.msk.f32.mxu0 %vm3300_vm5, %v3297_v12 }
 0x129   : > { %2974 = vmatprep.mubr.msk.f32.mxu1 %vm3300_vm5, %v3297_v12 }
 0x12a   : > { %3115 = vmatpush3.bf16.msra.mxu0 %v3114_v38 }
 0x12b   : > { %3121 = vmatpush3.bf16.msra.mxu1 %v3120_v46  ;;  %3122 = vmatprep.subr.bf16.mxu0 %v3299_v52 }
 0x12d   : > { %2964 = vmatmul.mubr.msk.f32.vlgmr.msra.gmra.mrb[6].mxu0 %vm307_vm8, %v2057_v22 }
 0x12e   : > { %2975 = vmatmul.mubr.msk.f32.vlgmr.msra.gmra.mrb[18].mxu1 %vm307_vm8, %v2137_v23  ;;  %3124 = vmatpush3.bf16.msra.mxu0 %v3123_v15 }
 0x12f   : > { %2985 = vmatprep.mubr.msk.f32.mxu0 %vm3300_vm5, %v3297_v12  ;;  %3125 = vmatprep.subr.bf16.mxu0 %v3299_v52 }
 0x132   : > { %3127 = vmatpush3.bf16.msra.mxu0 %v3126_v24 }
 0x135   : > { %2986 = vmatmul.mubr.msk.f32.vlgmr.msra.gmra.mrb[8].mxu0 %vm307_vm8, %v2217_v25 }
 0x190   : > { %v1106_v26 = vpop.f32.mrb[0].mxu1 }
 0x191   : > { %v2844_v27 = vpop.f32.mrb[1].mxu1 }
 0x198   : > { %v1179_v28 = vpop.f32.mrb[2].mxu1 }
 0x199   : > { %v1180_v31 = vadd.f32 %v1179_v28, %v1106_v26  ;;  %v2855_v32 = vpop.f32.mrb[3].mxu1 }
 0x1a0   : > { %v1258_v33 = vpop.f32.mrb[4].mxu1 }
 0x1a1   : > { %v1262_v34 = vadd.f32 %v1258_v33, %v1180_v31  ;;  %v2866_v35 = vpop.f32.mrb[5].mxu1 }
 0x1a8   : > { %v1338_v14 = vpop.f32.mrb[6].mxu1 }
 0x1a9   : > { %v1342_v36 = vadd.f32 %v1338_v14, %v1262_v34  ;;  %v2877_v37 = vpop.f32.mrb[7].mxu1 }
 0x1b0   : > { %v1418_v39 = vpop.f32.mrb[8].mxu1 }
 0x1b1   : > { %v1422_v40 = vadd.f32 %v1418_v39, %v1342_v36  ;;  %v2888_v12 = vpop.f32.mrb[9].mxu1 }
 0x1b8   : > { %v1498_v52 = vpop.f32.mrb[10].mxu1  ;;  %v2833_v41 = vpop.f32.mrb[0].mxu0 }
 0x1b9   : > { %v1502_v42 = vadd.f32 %v1498_v52, %v1422_v40  ;;  %v2899_v43 = vpop.f32.mrb[11].mxu1  ;;  %v909_v44 = vpop.f32.mrb[1].mxu0  ;;  %v922_v13 = vadd.f32 %v2833_v41, %v920_v45 }
 0x1ba   : > { %v921_v47 = vadd.f32 %v920_v45, %v909_v44 }
 0x1bb   : > { %v2571_v50 = vmul.f32 -1.442695, %v922_v13  ;;  %v2297_v13 = vstv %s2605_s26 }
 0x1bc   : > { %v2570_v54 = vmul.f32 -1.442695, %v921_v47 }
 0x1bd   : > { %3197 = vpow2.f32 %v2571_v50 }
 0x1be   : > { %3199 = vpow2.f32 %v2570_v54 }
 0x1c0   : > { %v1578_v48 = vpop.f32.mrb[12].mxu1 }
 0x1c1   : > { %v1582_v51 = vadd.f32 %v1578_v48, %v1502_v42  ;;  %v2910_v53 = vpop.f32.mrb[13].mxu1 }
 0x1c3   : > { %v1584_v55 = vadd.f32 %v1583_v49, %v1582_v51 }
 0x1c5   : > { %v2604_v56 = vmul.f32 -1.442695, %v1584_v55 }
 0x1c7   : > { %3201 = vpow2.f32 %v2604_v56  ;;  %v3198_v58 = vpop.eup %3197 }
 0x1c8   : > { %v3200_v59 = vpop.eup %3199  ;;  %v930_v63 = vadd.f32 1.0, %v3198_v58  ;;  %v2380_v58 = vsub.s32 1, %v3789_v2 }
 0x1c9   : > { %v929_v0 = vadd.f32 1.0, %v3200_v59 }
 0x1d1   : > { %v3202_v60 = vpop.eup %3201 }
 0x1d2   : > { %v1588_v62 = vadd.f32 1.0, %v3202_v60  ;;  %v2391_v60 = vsub.s32 2, %v3789_v2 }
 0x1d4   : > { %3203 = vrcp.f32 %v1588_v62 }
 0x1d5   : > { %3205 = vrcp.f32 %v930_v63  ;;  %v2402_v63 = vsub.s32 3, %v3789_v2 }
 0x1d6   : > { %3207 = vrcp.f32 %v929_v0 }
 0x1de   : > { %v3204_v6 = vpop.eup %3203 }
 0x1df   : > { %v1591_v8 = vmul.f32 0.33333334, %v3204_v6  ;;  %v3206_v9 = vpop.eup %3205 }
 0x1e0   : > { %v3208_v16 = vpop.eup %3207  ;;  %v936_v19 = vmul.f32 0.33333334, %v3206_v9 }
 0x1e1   : > { %v2321_v11 = vrot.slane %v1591_v8, %v2320_v4  ;;  %v935_v20 = vmul.f32 0.33333334, %v3208_v16  ;;  %v2309_v16 = vld [vmem:[%s3406_s15 + $0x18] sm:$0xff] }
 0x1e3   : > { %v2329_v17 = vrot.slane %v2321_v11, %v2320_v4  ;;  %v2322_v18 = vcombine.high %v2321_v11, %v2321_v11 }
 0x1e5   : > { %v2342_v29 = vrot.slane %v2329_v17, %v2341_v10  ;;  %v2336_v30 = vrot.slane %v2322_v18, %v2320_v4  ;;  %v2337_v38 = vcombine.high %v2329_v17, %v2329_v17 }
 0x1e7   : > { %v3894_v46 = vadd.f32 %v2342_v29, %v936_v19  ;;  %v3896_v57 = vadd.f32 %v2342_v29, %v935_v20  ;;  %v2346_v61 = vrot.slane %v2336_v30, %v2341_v10  ;;  %v2350_v15 = vrot.slane %v2337_v38, %v2341_v10 }
 0x1e8   : > { %v2338_v21 = vcombine.high %v2336_v30, %v2336_v30  ;;  %v2310_v30 = vld [vmem:[%s3406_s15 + $0x20] sm:$0xff] }
 0x1e9   : > { %v3898_v7 = vadd.f32 %v2346_v61, %v935_v20  ;;  %v3900_v22 = vadd.f32 %v2346_v61, %v936_v19  ;;  %v3902_v23 = vadd.f32 %v2350_v15, %v935_v20  ;;  %v3904_v24 = vadd.f32 %v2350_v15, %v936_v19 }
 0x1ea   : > { %v2354_v25 = vrot.slane %v2338_v21, %v2341_v10 }
 0x1ec   : > { %v3906_v26 = vadd.f32 %v2354_v25, %v935_v20  ;;  %v3908_v27 = vadd.f32 %v2354_v25, %v936_v19 }
 0x1f0   : > { %v1820_v28 = vpop.f32.mrb[2].mxu0 }
 0x1f1   : > { %v1893_v31 = vpop.f32.mrb[14].mxu1  ;;  %v2921_v33 = vpop.f32.mrb[3].mxu0 }
 0x1f2   : > { %v1894_v32 = vadd.f32 %v1893_v31, %v1820_v28  ;;  %v2932_v34 = vpop.f32.mrb[15].mxu1  ;;  %v2313_v28 = vld [vmem:[%s3406_s15 + $0x38] sm:$0xff] }
 0x1f8   : > { %v1972_v35 = vpop.f32.mrb[4].mxu0 }
 0x1f9   : > { %v2052_v14 = vpop.f32.mrb[16].mxu1  ;;  %v1976_v36 = vadd.f32 %v1972_v35, %v1894_v32  ;;  %v2943_v37 = vpop.f32.mrb[5].mxu0 }
 0x1fa   : > { %v2954_v39 = vpop.f32.mrb[17].mxu1 }
 0x1fb   : > { %v2056_v40 = vadd.f32 %v2052_v14, %v1976_v36 }
 0x200   : > { %v2132_v12 = vpop.f32.mrb[6].mxu0 }
 0x201   : > { %v2212_v52 = vpop.f32.mrb[18].mxu1  ;;  %v2136_v41 = vadd.f32 %v2132_v12, %v2056_v40  ;;  %v2965_v42 = vpop.f32.mrb[7].mxu0 }
 0x202   : > { %v2976_v43 = vpop.f32.mrb[19].mxu1 }
 0x203   : > { %v2216_v44 = vadd.f32 %v2212_v52, %v2136_v41 }
 0x208   : > { %v2292_v45 = vpop.f32.mrb[8].mxu0 }
 0x209   : > { %v2296_v47 = vadd.f32 %v2292_v45, %v2216_v44  ;;  %v2987_v48 = vpop.f32.mrb[9].mxu0 }
 0x20b   : > { %v2298_v49 = vadd.f32 %v2297_v13, %v2296_v47 }
 0x20d   : > { %v2637_v50 = vmul.f32 -1.442695, %v2298_v49 }
 0x20f   : > { %3209 = vpow2.f32 %v2637_v50 }
 0x219   : > { %v3210_v51 = vpop.eup %3209 }
 0x21a   : > { %v2302_v53 = vadd.f32 1.0, %v3210_v51 }
 0x21c   : > { %3211 = vrcp.f32 %v2302_v53 }
 0x226   : > { %v3212_v54 = vpop.eup %3211 }
 0x227   : > { %v2305_v55 = vmul.f32 0.33333334, %v3212_v54 }
 0x229   : > { %v2370_v56 = vrot.slane %v2305_v55, %v2341_v10  ;;  %v2381_v59 = vrot.slane %v2305_v55, %v2380_v58  ;;  %v2392_v62 = vrot.slane %v2305_v55, %v2391_v60  ;;  %v2403_v0 = vrot.slane %v2305_v55, %v2402_v63  ;;  %v2308_v10 = vld [vmem:[%s3406_s15 + $0x10] sm:$0xff] }
 0x22b   : > { %2376 = vbcast.lane.b32.xlu1 %v2370_v56, 264  ;;  %2372 = vbcast.lane.b32.xlu0 %v2370_v56, 256 }
 0x22f   : > { %2383 = vbcast.lane.b32.xlu1 %v2381_v59, 256  ;;  %2387 = vbcast.lane.b32.xlu0 %v2381_v59, 264 }
 0x233   : > { %2394 = vbcast.lane.b32.xlu1 %v2392_v62, 256  ;;  %2398 = vbcast.lane.b32.xlu0 %v2392_v62, 264 }
 0x237   : > { %2405 = vbcast.lane.b32.xlu1 %v2403_v0, 256  ;;  %2409 = vbcast.lane.b32.xlu0 %v2403_v0, 264 }
 0x29d   : > { %v2377_v3 = vpop.permute.xlu1 %2376  ;;  %v2373_v4 = vpop.permute.xlu0 %2372 }
 0x29e   : > { %v2412_v6 = vadd.f32 %v2377_v3, %v3894_v46  ;;  %v2411_v8 = vadd.f32 %v2373_v4, %v3896_v57  ;;  %v2311_v46 = vld [vmem:[%s3406_s15 + $0x28] sm:$0xff] }
 0x2a0   : > { %v2420_v2 = vmul.f32 %v2412_v6, %v2307_v1  ;;  %v2419_v9 = vmul.f32 %v2411_v8, %v2306_v5 }
 0x2a1   : > { %v2384_v11 = vpop.permute.xlu1 %2383  ;;  %v2388_v17 = vpop.permute.xlu0 %2387 }
 0x2a2   : > { %2428 = vst.msk [vmem:[%s3922_s9 + $0x8] sm:$0xff] %vm245_vm0, %v2420_v2  ;;  %2427 = vst.msk [vmem:[%s3922_s9] sm:$0xff] %vm245_vm0, %v2419_v9  ;;  %v2413_v18 = vadd.f32 %v2384_v11, %v3898_v7  ;;  %v2414_v19 = vadd.f32 %v2388_v17, %v3900_v22  ;;  %v2312_v22 = vld [vmem:[%s3406_s15 + $0x30] sm:$0xff]  ;;  %s3228_s15 = scalar_lea.vmem %s3953_s11, 1024 }
 0x2a3   : > { %p3229_p9 = scmp.ne.s32.totalorder %s3953_s11, %s3228_s15  ;;  %p3236_p0 = scmp.lt.s32.totalorder %s3234_s23, %s3228_s15 }
 0x2a4   : > { %v2421_v20 = vmul.f32 %v2413_v18, %v2308_v10  ;;  %v2422_v29 = vmul.f32 %v2414_v19, %v2309_v16 }
 0x2a5   : > { %v2395_v38 = vpop.permute.xlu1 %2394  ;;  %v2399_v57 = vpop.permute.xlu0 %2398  ;;  %p3230_p10 = pnand %p3229_p9, %p3373_p5  ;;  %p3237_p1 = por %p3236_p0, %p3235_p13 }
 0x2a6   : > { %2429 = vst.msk [vmem:[%s3922_s9 + $0x10] sm:$0xff] %vm245_vm0, %v2421_v20  ;;  %2430 = vst.msk [vmem:[%s3922_s9 + $0x18] sm:$0xff] %vm245_vm0, %v2422_v29  ;;  %v2415_v61 = vadd.f32 %v2395_v38, %v3902_v23  ;;  %v2416_v15 = vadd.f32 %v2399_v57, %v3904_v24 }
 0x2a7   : > { %p3231_p12 = pneg %p3230_p10 }
 0x2a8   : > { %v2423_v21 = vmul.f32 %v2415_v61, %v2310_v30  ;;  %v2424_v7 = vmul.f32 %v2416_v15, %v2311_v46 }
 0x2a9   : > { %v2406_v25 = vpop.permute.xlu1 %2405  ;;  %v2410_v31 = vpop.permute.xlu0 %2409  ;;  %p3238_p2 = pnand %p3237_p1, %p3231_p12 }
 0x2aa   : > { %2431 = vst.msk [vmem:[%s3922_s9 + $0x20] sm:$0xff] %vm245_vm0, %v2423_v21  ;;  %2432 = vst.msk [vmem:[%s3922_s9 + $0x28] sm:$0xff] %vm245_vm0, %v2424_v7  ;;  %v2417_v23 = vadd.f32 %v2406_v25, %v3906_v26  ;;  %v2418_v24 = vadd.f32 %v2410_v31, %v3908_v27 }
 0x2ac   : > { %v2425_v32 = vmul.f32 %v2417_v23, %v2312_v22  ;;  %v2426_v33 = vmul.f32 %v2418_v24, %v2313_v28 }
 0x2ae   : > { %2433 = vst.msk [vmem:[%s3922_s9 + $0x30] sm:$0xff] %vm245_vm0, %v2425_v32  ;;  %2434 = vst.msk [vmem:[%s3922_s9 + $0x38] sm:$0xff] %vm245_vm0, %v2426_v33 }
 0x2af   : > { %3241 = shalt.err (!%p3238_p2)
}
 0x2b0   : > { %s3242_s25 = scalar_lea.hbm %s3951_s14, 1024  ;;  %s3246_s26 = scalar_lea.hbm %s4007_s5, 2048 }
 0x2b1   : > { %p3243_p3 = scmp.ne.s32.totalorder %s3951_s14, %s3242_s25  ;;  %p3247_p8 = scmp.lt.u32.totalorder %s3951_s14, %s4007_s5 }
 0x2b2   : > { %p3248_p11 = scmp.lt.u32.totalorder %s3246_s26, %s3242_s25  ;;  %p3250_p10 = scmp.lt.u32.totalorder %s3242_s25, %s3951_s14 }
 0x2b3   : > { %p3244_p4 = pnand %p3243_p3, %p3373_p5 }
 0x2b4   : > { %p3249_p9 = por %p3248_p11, %p3247_p8 }
 0x2b5   : > { %p3245_p7 = pneg %p3244_p4 }
 0x2b6   : > { %p3251_p12 = por %p3250_p10, %p3249_p9 }
 0x2b8   : > { %p3252_p13 = pnand %p3251_p12, %p3245_p7 }
 0x2ba   : > { %3255 = shalt.err (!%p3252_p13)
}
 0x2bb   : > { %s3303_s9 = smov 128   ;;  %s3304_s10 = smov 8  }
 0x2bc   : > { %3144 = dma.vmem_to_hbm [thread:$0]  (%p3373_p5), %s3953_s11, 1024, %s3951_s14, %s3961_s22, %s3303_s9, %s3303_s9, %s3304_s10  }
 0x2bd PF: > { %p3156_p0 = scmp.ge.s32.totalorder %s3294_s21, 2  ;;  %s2464_s12 = sand.u32 1, %s3282_s18  }
 0x2be   : > { %s2465_s13 = scalar_lea.sflag [#allocation6], %s2464_s12 }
 0x2bf   : > { %p3151_p1 = pnand %p3156_p0, %p3377_p6 }
 0x2c1   : > { %3277 = dma.done.wait (!%p3151_p1), %s2465_s13, 1024  }
 0x2c2   : > { %3279 = vsyncadd (!%p3151_p1), %s2465_s13, 4294966272  ;;  %p16_p2 = scmp.ge.s32.totalorder %s3360_s24, 4   ;;  %s4011_s18 = smov %s3286_s19 }
 0x2c3   : > { %s4012_s19 = smov %s3290_s20  ;;  %s4013_s20 = smov %s3371_s27 }
 0x2c4   : > { %s4014_s21 = smov %s3360_s24  ;;  %18 = sbr.rel (!%p16_p2) target bundleno = 4 (0x4), region = 98 }
 0x2cb   :  { %2470 = vsyncpa [#allocation6], 1 }
 0x2cc   :  { %2472 = vsyncpa [#allocation6 + $0x1], 1 }
 0x2cd   :  { %2473 = vsyncpa [#allocation7], 1 }
 0x2ce   :  { %2475 = vsyncpa [#allocation7 + $0x1], 1 }

</bundles_post_ra>
